<compile_context>
chip_gen: v7x
topology: tpu7x:2x2x1
jax: 0.10.0
libtpu: 0.0.40
codegen_flags: <defaults>
</compile_context>

<pallas_src>
import functools

import jax
import jax.numpy as jnp
from jax.experimental import pallas as pl
from jax.experimental.pallas import tpu as pltpu

HIDDEN = 256


# ----------------------------------------------------------------------------
# Kernel
# ----------------------------------------------------------------------------
def _ac_kernel(s_ref, ns_ref, w1_ref, b1_ref, w2_ref, b2_ref, wh_ref, bh_ref,
               out_ref, *, A):
    H = HIDDEN
    TB, OUT_W = out_ref.shape

    s = s_ref[...].astype(jnp.bfloat16)                     # [TB, s_dim]
    ns = ns_ref[...].astype(jnp.bfloat16)

    # ---- layer 1: all four nets on s; only the v-net columns on next_s ------
    h1_s = jnp.dot(s, w1_ref[...], preferred_element_type=jnp.float32) + b1_ref[...]
    h1_s = jnp.maximum(h1_s, 0.0)                           # [TB, 4H] f32
    h1_ns = (jnp.dot(ns, w1_ref[:, 2 * H:3 * H],            # 128-aligned lane slice
                     preferred_element_type=jnp.float32) + b1_ref[:, 2 * H:3 * H])
    h1_ns = jnp.maximum(h1_ns, 0.0)                         # [TB, H] f32

    # ---- layer 2: per-net dots (q1 | q2 | v(s) | actor) + v(next_s) ---------
    def layer2(h1n, n):
        h2n = (jnp.dot(h1n.astype(jnp.bfloat16), w2_ref[n],
                       preferred_element_type=jnp.float32) + b2_ref[n])
        return jnp.maximum(h2n, 0.0)                        # [TB, H] f32

    h2_blocks = [layer2(h1_s[:, n * H:(n + 1) * H], n) for n in range(4)]
    h2_blocks.append(layer2(h1_ns, 2))                      # v-net on next_s
    h2_all = jnp.concatenate([b.astype(jnp.bfloat16) for b in h2_blocks], axis=1)

    # ---- single block-diagonal head matmul, lane-dense [TB, OUT_W] ----------
    # head column layout:
    #   0:A      q1 advantage        A:2A     q2 advantage
    #   2A:3A    actor logits (pi)   3A:4A    actor logits (log_pi copy)
    #   4A       v(s)                4A+1     v(next_s)
    #   4A+2     q1 V                4A+3     q2 V            rest: 0
    hd = (jnp.dot(h2_all, wh_ref[...], preferred_element_type=jnp.float32)
          + bh_ref[...])

    # ---- in-place dueling / softmax fix-up (single full-width store) --------
    lane = jax.lax.broadcasted_iota(jnp.int32, (TB, OUT_W), 1)
    g_q1 = lane < A
    g_q2 = (lane >= A) & (lane < 2 * A)
    g_pi = (lane >= 2 * A) & (lane < 3 * A)
    g_lpi = (lane >= 3 * A) & (lane < 4 * A)
    g_tail = lane >= 4 * A + 2

    q1V = hd[:, 4 * A + 2:4 * A + 3]
    q2V = hd[:, 4 * A + 3:4 * A + 4]
    mean1 = jnp.mean(hd[:, 0:A], axis=1, keepdims=True)
    mean2 = jnp.mean(hd[:, A:2 * A], axis=1, keepdims=True)
    logits = hd[:, 2 * A:3 * A]
    mlog = jnp.max(logits, axis=1, keepdims=True)
    se = jnp.sum(jnp.exp(logits - mlog), axis=1, keepdims=True)
    inv_se = pl.reciprocal(se)                              # exact: keeps sum(pi)==1
    log_se = jnp.log(se)

    # additive correction: dueling combine for q1/q2, max-shift for logit lanes
    corr = (jnp.where(g_q1, q1V - mean1, 0.0)
            + jnp.where(g_q2, q2V - mean2, 0.0)
            - jnp.where(g_pi | g_lpi, mlog, 0.0))
    base = hd + corr
    out = jnp.where(g_pi, jnp.exp(base) * inv_se,
                    jnp.where(g_lpi, base - log_se, base))
    out_ref[...] = jnp.where(g_tail, 0.0, out)


# ----------------------------------------------------------------------------
# Params (torch-style init) and packing into a few dense slabs
# ----------------------------------------------------------------------------
def _init_linear(key, fan_in, fan_out):
    # torch.nn.Linear default init: U(-1/sqrt(fan_in), 1/sqrt(fan_in)); W stored [in, out].
    kw, kb = jax.random.split(key)
    bound = 1.0 / float(fan_in) ** 0.5
    w = jax.random.uniform(kw, (fan_in, fan_out), jnp.float32, -bound, bound)
    b = jax.random.uniform(kb, (1, fan_out), jnp.float32, -bound, bound)
    return w, b


def init_params(key, s_dim, n_actions, hidden=HIDDEN):
    keys = jax.random.split(key, 16)
    p = {}
    p["q1w1"], p["q1b1"] = _init_linear(keys[0], s_dim, hidden)
    p["q1w2"], p["q1b2"] = _init_linear(keys[1], hidden, hidden)
    p["q1wV"], p["q1bV"] = _init_linear(keys[2], hidden, 1)
    p["q1wA"], p["q1bA"] = _init_linear(keys[3], hidden, n_actions)
    p["q2w1"], p["q2b1"] = _init_linear(keys[4], s_dim, hidden)
    p["q2w2"], p["q2b2"] = _init_linear(keys[5], hidden, hidden)
    p["q2wV"], p["q2bV"] = _init_linear(keys[6], hidden, 1)
    p["q2wA"], p["q2bA"] = _init_linear(keys[7], hidden, n_actions)
    # v (v_target is an exact copy -> shares these arrays)
    p["vw1"], p["vb1"] = _init_linear(keys[8], s_dim, hidden)
    p["vw2"], p["vb2"] = _init_linear(keys[9], hidden, hidden)
    p["vw3"], p["vb3"] = _init_linear(keys[10], hidden, 1)
    p["aw1"], p["ab1"] = _init_linear(keys[11], s_dim, hidden)
    p["aw2"], p["ab2"] = _init_linear(keys[12], hidden, hidden)
    p["aw3"], p["ab3"] = _init_linear(keys[13], hidden, n_actions)
    # log_alpha (nn.init.constant_(self.log_alpha, 0.0))
    p["log_alpha"] = jnp.zeros((1,), jnp.float32)
    return p


def pack_params(p, n_actions, hidden=HIDDEN):
    """Pack per-layer tensors into 6 dense slabs; weights bf16, biases f32."""
    A = n_actions
    H = hidden
    OUT_W = max(128, ((4 * A + 4 + 127) // 128) * 128)
    wdt = jnp.bfloat16

    # layer-1 slab: [s_dim, 4H], net order q1|q2|v|actor
    W1 = jnp.concatenate([p["q1w1"], p["q2w1"], p["vw1"], p["aw1"]], axis=1).astype(wdt)
    b1 = jnp.concatenate([p["q1b1"], p["q2b1"], p["vb1"], p["ab1"]], axis=1)

    # layer-2 slab: [4, H, H]
    W2 = jnp.stack([p["q1w2"], p["q2w2"], p["vw2"], p["aw2"]], axis=0).astype(wdt)
    b2 = jnp.stack([p["q1b2"], p["q2b2"], p["vb2"], p["ab2"]], axis=0)    # [4,1,H]

    # block-diagonal head slab: [5H, OUT_W]; row blocks = (q1, q2, v(s), actor, v(next_s))
    WH = jnp.zeros((5 * H, OUT_W), jnp.float32)
    bH = jnp.zeros((1, OUT_W), jnp.float32)
    WH = WH.at[0:H, 0:A].set(p["q1wA"]).at[0:H, 4 * A + 2:4 * A + 3].set(p["q1wV"])
    WH = WH.at[H:2 * H, A:2 * A].set(p["q2wA"]).at[H:2 * H, 4 * A + 3:4 * A + 4].set(p["q2wV"])
    WH = WH.at[2 * H:3 * H, 4 * A:4 * A + 1].set(p["vw3"])
    WH = WH.at[3 * H:4 * H, 2 * A:3 * A].set(p["aw3"]).at[3 * H:4 * H, 3 * A:4 * A].set(p["aw3"])
    WH = WH.at[4 * H:5 * H, 4 * A + 1:4 * A + 2].set(p["vw3"])
    bH = bH.at[:, 0:A].set(p["q1bA"]).at[:, 4 * A + 2:4 * A + 3].set(p["q1bV"])
    bH = bH.at[:, A:2 * A].set(p["q2bA"]).at[:, 4 * A + 3:4 * A + 4].set(p["q2bV"])
    bH = bH.at[:, 2 * A:3 * A].set(p["ab3"]).at[:, 3 * A:4 * A].set(p["ab3"])
    bH = bH.at[:, 4 * A:4 * A + 1].set(p["vb3"]).at[:, 4 * A + 1:4 * A + 2].set(p["vb3"])
    WH = WH.astype(wdt)

    return {"W1": W1, "b1": b1, "W2": W2, "b2": b2, "WH": WH, "bH": bH,
            "log_alpha": p["log_alpha"]}


# ----------------------------------------------------------------------------
# Forward wrapper
# ----------------------------------------------------------------------------
@functools.partial(jax.jit, static_argnames=("n_actions",))
def actor_critic_forward(packed, s, next_s, *, n_actions):
    B, s_dim = s.shape
    A = n_actions
    OUT_W = packed["WH"].shape[1]

    # batch row-tiling: one tile at small B, 256-row tiles otherwise
    TB = 256 if B > 256 else max(8, ((B + 7) // 8) * 8)
    Bp = ((B + TB - 1) // TB) * TB
    n_tiles = Bp // TB

    s_p = jnp.pad(s.astype(jnp.float32), ((0, Bp - B), (0, 0)))
    ns_p = jnp.pad(next_s.astype(jnp.float32), ((0, Bp - B), (0, 0)))

    row_spec = pl.BlockSpec((TB, s_dim), lambda i: (i, 0))
    out_spec = pl.BlockSpec((TB, OUT_W), lambda i: (i, 0))
    w_specs = [
        pl.BlockSpec(packed["W1"].shape, lambda i: (0, 0)),
        pl.BlockSpec(packed["b1"].shape, lambda i: (0, 0)),
        pl.BlockSpec(packed["W2"].shape, lambda i: (0, 0, 0)),
        pl.BlockSpec(packed["b2"].shape, lambda i: (0, 0, 0)),
        pl.BlockSpec(packed["WH"].shape, lambda i: (0, 0)),
        pl.BlockSpec(packed["bH"].shape, lambda i: (0, 0)),
    ]

    kernel = functools.partial(_ac_kernel, A=A)
    out = pl.pallas_call(
        kernel,
        out_shape=jax.ShapeDtypeStruct((Bp, OUT_W), jnp.float32),
        grid=(n_tiles,),
        in_specs=[row_spec, row_spec] + w_specs,
        out_specs=out_spec,
        compiler_params=pltpu.CompilerParams(
            dimension_semantics=("parallel",)),
    )(s_p, ns_p, packed["W1"], packed["b1"], packed["W2"], packed["b2"],
      packed["WH"], packed["bH"])

    q1 = out[:B, 0:A]
    q2 = out[:B, A:2 * A]
    pi = out[:B, 2 * A:3 * A]
    log_pi = out[:B, 3 * A:4 * A]
    v = out[:B, 4 * A:4 * A + 1]
    next_v = out[:B, 4 * A + 1:4 * A + 2]
    log_alpha = packed["log_alpha"].reshape(-1, 1)          # .view(-1, 1) -> (1, 1)
    return q1, q2, v, next_v, pi, log_pi, log_alpha


# ----------------------------------------------------------------------------
# Pure-JAX references (for correctness checks only)
# ----------------------------------------------------------------------------
def reference_forward(p, s, next_s, quantized=False):
    """quantized=True mimics the kernel's bf16 MXU inputs with f32 accumulation."""
    hp = jax.lax.Precision.HIGHEST

    def dot(x, w):
        if quantized:
            return jnp.dot(x.astype(jnp.bfloat16), w.astype(jnp.bfloat16),
                           preferred_element_type=jnp.float32)
        return jnp.dot(x, w, precision=hp)

    def mlp2(x, w1, b1, w2, b2):
        h = jnp.maximum(dot(x, w1) + b1, 0.0)
        return jnp.maximum(dot(h, w2) + b2, 0.0)

    def dueling(x, w1, b1, w2, b2, wV, bV, wA, bA):
        h = mlp2(x, w1, b1, w2, b2)
        V = dot(h, wV) + bV
        Aa = dot(h, wA) + bA
        return V + Aa - jnp.mean(Aa, axis=1, keepdims=True)

    q1 = dueling(s, p["q1w1"], p["q1b1"], p["q1w2"], p["q1b2"],
                 p["q1wV"], p["q1bV"], p["q1wA"], p["q1bA"])
    q2 = dueling(s, p["q2w1"], p["q2b1"], p["q2w2"], p["q2b2"],
                 p["q2wV"], p["q2bV"], p["q2wA"], p["q2bA"])
    hv = mlp2(s, p["vw1"], p["vb1"], p["vw2"], p["vb2"])
    v = dot(hv, p["vw3"]) + p["vb3"]
    hnv = mlp2(next_s, p["vw1"], p["vb1"], p["vw2"], p["vb2"])
    nv = dot(hnv, p["vw3"]) + p["vb3"]
    ha = mlp2(s, p["aw1"], p["ab1"], p["aw2"], p["ab2"])
    logits = dot(ha, p["aw3"]) + p["ab3"]
    m = jnp.max(logits, axis=1, keepdims=True)
    z = logits - m
    e = jnp.exp(z)
    se = jnp.sum(e, axis=1, keepdims=True)
    pi = e / se
    log_pi = z - jnp.log(se)
    return q1, q2, v, nv, pi, log_pi, p["log_alpha"].reshape(-1, 1)


# ----------------------------------------------------------------------------
if __name__ == "__main__":
    B, S_DIM, N_ACTIONS = 4, 32, 8

    key = jax.random.PRNGKey(0)
    k_params, k_s, k_ns = jax.random.split(key, 3)
    params = init_params(k_params, S_DIM, N_ACTIONS)
    packed = pack_params(params, N_ACTIONS)
    s = jax.random.normal(k_s, (B, S_DIM), jnp.float32)
    next_s = jax.random.normal(k_ns, (B, S_DIM), jnp.float32)

    outs = actor_critic_forward(packed, s, next_s, n_actions=N_ACTIONS)
    outs = jax.block_until_ready(outs)
    q1, q2, v, next_v, pi, log_pi, log_alpha = outs

    # shape checks
    assert q1.shape == (B, N_ACTIONS) and q2.shape == (B, N_ACTIONS)
    assert v.shape == (B, 1) and next_v.shape == (B, 1)
    assert pi.shape == (B, N_ACTIONS) and log_pi.shape == (B, N_ACTIONS)
    assert log_alpha.shape == (1, 1)

    # softmax consistency (pl.reciprocal is exact -> 1e-5 holds)
    assert jnp.allclose(jnp.sum(pi, axis=1), 1.0, atol=1e-5)
    assert jnp.allclose(jnp.exp(log_pi), pi, atol=1e-5)

    # tight check vs reference using the same bf16 MXU-input quantization
    refs_q = reference_forward(params, s, next_s, quantized=True)
    for got, ref in zip(outs, refs_q):
        assert jnp.allclose(got, ref, atol=1e-3, rtol=1e-3), (
            f"quantized-ref mismatch: max abs err = {jnp.max(jnp.abs(got - ref))}")

    # loose check vs the full-f32 torch-semantics reference (bf16 weight path)
    refs = reference_forward(params, s, next_s, quantized=False)
    for got, ref in zip(outs, refs):
        assert jnp.allclose(got, ref, atol=5e-2, rtol=5e-2), (
            f"f32-ref mismatch: max abs err = {jnp.max(jnp.abs(got - ref))}")

    print("KERNEL_OK")
</pallas_src>

<mosaic_0001>
module attributes {stable_mosaic.version = 11 : i64} {
  func.func @_ac_kernel(%arg0: i32, %arg1: memref<8x32xf32, #tpu.memory_space<vmem>>, %arg2: memref<8x32xf32, #tpu.memory_space<vmem>>, %arg3: memref<32x1024xbf16, #tpu.memory_space<vmem>>, %arg4: memref<1x1024xf32, #tpu.memory_space<vmem>>, %arg5: memref<4x256x256xbf16, #tpu.memory_space<vmem>>, %arg6: memref<4x1x256xf32, #tpu.memory_space<vmem>>, %arg7: memref<1280x128xbf16, #tpu.memory_space<vmem>>, %arg8: memref<1x128xf32, #tpu.memory_space<vmem>>, %arg9: memref<8x128xf32, #tpu.memory_space<vmem>>) attributes {dimension_semantics = [#tpu.dimension_semantics<parallel>], iteration_bounds = array<i64: 1>, scalar_prefetch = 0 : i64, scratch_operands = 0 : i64, tpu.core_type = #tpu.core_type<tc>, window_params = [{transform_indices = @transform_0, window_bounds = array<i64: 8, 32>}, {transform_indices = @transform_1, window_bounds = array<i64: 8, 32>}, {pipeline_mode = #tpu.pipeline_mode<synchronous>, transform_indices = @transform_2, window_bounds = array<i64: 32, 1024>}, {pipeline_mode = #tpu.pipeline_mode<synchronous>, transform_indices = @transform_3, window_bounds = array<i64: 1, 1024>}, {pipeline_mode = #tpu.pipeline_mode<synchronous>, transform_indices = @transform_4, window_bounds = array<i64: 4, 256, 256>}, {pipeline_mode = #tpu.pipeline_mode<synchronous>, transform_indices = @transform_5, window_bounds = array<i64: 4, 1, 256>}, {pipeline_mode = #tpu.pipeline_mode<synchronous>, transform_indices = @transform_6, window_bounds = array<i64: 1280, 128>}, {pipeline_mode = #tpu.pipeline_mode<synchronous>, transform_indices = @transform_7, window_bounds = array<i64: 1, 128>}, {transform_indices = @transform_8, window_bounds = array<i64: 8, 128>}]} {
    %c0 = arith.constant 0 : index
    %c0_0 = arith.constant 0 : index
    %0 = vector.load %arg1[%c0, %c0_0] : memref<8x32xf32, #tpu.memory_space<vmem>>, vector<8x32xf32>
    %1 = arith.truncf %0 : vector<8x32xf32> to vector<8x32xbf16>
    %c0_1 = arith.constant 0 : index
    %c0_2 = arith.constant 0 : index
    %2 = vector.load %arg2[%c0_1, %c0_2] : memref<8x32xf32, #tpu.memory_space<vmem>>, vector<8x32xf32>
    %3 = arith.truncf %2 : vector<8x32xf32> to vector<8x32xbf16>
    %c0_3 = arith.constant 0 : index
    %c0_4 = arith.constant 0 : index
    %4 = vector.load %arg3[%c0_3, %c0_4] : memref<32x1024xbf16, #tpu.memory_space<vmem>>, vector<32x1024xbf16>
    %cst = arith.constant dense<0.000000e+00> : vector<8x1024xf32>
    %5 = tpu.matmul %1, %4, %cst {dimension_numbers = #tpu.dot_dimension_numbers<[1], [0], [0], [1], [0, 0, 1, 1], [], []>} : vector<8x32xbf16>, vector<32x1024xbf16>, vector<8x1024xf32> -> vector<8x1024xf32>
    %c0_5 = arith.constant 0 : index
    %c0_6 = arith.constant 0 : index
    %6 = vector.load %arg4[%c0_5, %c0_6] : memref<1x1024xf32, #tpu.memory_space<vmem>>, vector<1x1024xf32>
    %7 = vector.broadcast %6 : vector<1x1024xf32> to vector<8x1024xf32>
    %8 = arith.addf %5, %7 : vector<8x1024xf32>
    %cst_7 = arith.constant 0.000000e+00 : f32
    %9 = vector.broadcast %cst_7 : f32 to vector<8x1024xf32>
    %10 = arith.maximumf %8, %9 : vector<8x1024xf32>
    %c0_8 = arith.constant 0 : index
    %c512 = arith.constant 512 : index
    %11 = vector.load %arg3[%c0_8, %c512] : memref<32x1024xbf16, #tpu.memory_space<vmem>>, vector<32x256xbf16>
    %cst_9 = arith.constant dense<0.000000e+00> : vector<8x256xf32>
    %12 = tpu.matmul %3, %11, %cst_9 {dimension_numbers = #tpu.dot_dimension_numbers<[1], [0], [0], [1], [0, 0, 1, 1], [], []>} : vector<8x32xbf16>, vector<32x256xbf16>, vector<8x256xf32> -> vector<8x256xf32>
    %c0_10 = arith.constant 0 : index
    %c512_11 = arith.constant 512 : index
    %13 = vector.load %arg4[%c0_10, %c512_11] : memref<1x1024xf32, #tpu.memory_space<vmem>>, vector<1x256xf32>
    %14 = vector.broadcast %13 : vector<1x256xf32> to vector<8x256xf32>
    %15 = arith.addf %12, %14 : vector<8x256xf32>
    %cst_12 = arith.constant 0.000000e+00 : f32
    %16 = vector.broadcast %cst_12 : f32 to vector<8x256xf32>
    %17 = arith.maximumf %15, %16 : vector<8x256xf32>
    %18 = vector.extract_strided_slice %10 {offsets = [0, 0], sizes = [8, 256], strides = [1, 1]} : vector<8x1024xf32> to vector<8x256xf32>
    %19 = arith.truncf %18 : vector<8x256xf32> to vector<8x256xbf16>
    %c0_13 = arith.constant 0 : index
    %c0_14 = arith.constant 0 : index
    %c0_15 = arith.constant 0 : index
    %20 = vector.load %arg5[%c0_13, %c0_14, %c0_15] : memref<4x256x256xbf16, #tpu.memory_space<vmem>>, vector<1x256x256xbf16>
    %21 = vector.shape_cast %20 : vector<1x256x256xbf16> to vector<256x256xbf16>
    %cst_16 = arith.constant dense<0.000000e+00> : vector<8x256xf32>
    %22 = tpu.matmul %19, %21, %cst_16 {dimension_numbers = #tpu.dot_dimension_numbers<[1], [0], [0], [1], [0, 0, 1, 1], [], []>} : vector<8x256xbf16>, vector<256x256xbf16>, vector<8x256xf32> -> vector<8x256xf32>
    %c0_17 = arith.constant 0 : index
    %c0_18 = arith.constant 0 : index
    %c0_19 = arith.constant 0 : index
    %23 = vector.load %arg6[%c0_17, %c0_18, %c0_19] : memref<4x1x256xf32, #tpu.memory_space<vmem>>, vector<1x1x256xf32>
    %24 = vector.shape_cast %23 : vector<1x1x256xf32> to vector<1x256xf32>
    %25 = vector.broadcast %24 : vector<1x256xf32> to vector<8x256xf32>
    %26 = arith.addf %22, %25 : vector<8x256xf32>
    %cst_20 = arith.constant 0.000000e+00 : f32
    %27 = vector.broadcast %cst_20 : f32 to vector<8x256xf32>
    %28 = arith.maximumf %26, %27 : vector<8x256xf32>
    %29 = vector.extract_strided_slice %10 {offsets = [0, 256], sizes = [8, 256], strides = [1, 1]} : vector<8x1024xf32> to vector<8x256xf32>
    %30 = arith.truncf %29 : vector<8x256xf32> to vector<8x256xbf16>
    %c1 = arith.constant 1 : index
    %c0_21 = arith.constant 0 : index
    %c0_22 = arith.constant 0 : index
    %31 = vector.load %arg5[%c1, %c0_21, %c0_22] : memref<4x256x256xbf16, #tpu.memory_space<vmem>>, vector<1x256x256xbf16>
    %32 = vector.shape_cast %31 : vector<1x256x256xbf16> to vector<256x256xbf16>
    %cst_23 = arith.constant dense<0.000000e+00> : vector<8x256xf32>
    %33 = tpu.matmul %30, %32, %cst_23 {dimension_numbers = #tpu.dot_dimension_numbers<[1], [0], [0], [1], [0, 0, 1, 1], [], []>} : vector<8x256xbf16>, vector<256x256xbf16>, vector<8x256xf32> -> vector<8x256xf32>
    %c1_24 = arith.constant 1 : index
    %c0_25 = arith.constant 0 : index
    %c0_26 = arith.constant 0 : index
    %34 = vector.load %arg6[%c1_24, %c0_25, %c0_26] : memref<4x1x256xf32, #tpu.memory_space<vmem>>, vector<1x1x256xf32>
    %35 = vector.shape_cast %34 : vector<1x1x256xf32> to vector<1x256xf32>
    %36 = vector.broadcast %35 : vector<1x256xf32> to vector<8x256xf32>
    %37 = arith.addf %33, %36 : vector<8x256xf32>
    %cst_27 = arith.constant 0.000000e+00 : f32
    %38 = vector.broadcast %cst_27 : f32 to vector<8x256xf32>
    %39 = arith.maximumf %37, %38 : vector<8x256xf32>
    %40 = vector.extract_strided_slice %10 {offsets = [0, 512], sizes = [8, 256], strides = [1, 1]} : vector<8x1024xf32> to vector<8x256xf32>
    %41 = arith.truncf %40 : vector<8x256xf32> to vector<8x256xbf16>
    %c2 = arith.constant 2 : index
    %c0_28 = arith.constant 0 : index
    %c0_29 = arith.constant 0 : index
    %42 = vector.load %arg5[%c2, %c0_28, %c0_29] : memref<4x256x256xbf16, #tpu.memory_space<vmem>>, vector<1x256x256xbf16>
    %43 = vector.shape_cast %42 : vector<1x256x256xbf16> to vector<256x256xbf16>
    %cst_30 = arith.constant dense<0.000000e+00> : vector<8x256xf32>
    %44 = tpu.matmul %41, %43, %cst_30 {dimension_numbers = #tpu.dot_dimension_numbers<[1], [0], [0], [1], [0, 0, 1, 1], [], []>} : vector<8x256xbf16>, vector<256x256xbf16>, vector<8x256xf32> -> vector<8x256xf32>
    %c2_31 = arith.constant 2 : index
    %c0_32 = arith.constant 0 : index
    %c0_33 = arith.constant 0 : index
    %45 = vector.load %arg6[%c2_31, %c0_32, %c0_33] : memref<4x1x256xf32, #tpu.memory_space<vmem>>, vector<1x1x256xf32>
    %46 = vector.shape_cast %45 : vector<1x1x256xf32> to vector<1x256xf32>
    %47 = vector.broadcast %46 : vector<1x256xf32> to vector<8x256xf32>
    %48 = arith.addf %44, %47 : vector<8x256xf32>
    %cst_34 = arith.constant 0.000000e+00 : f32
    %49 = vector.broadcast %cst_34 : f32 to vector<8x256xf32>
    %50 = arith.maximumf %48, %49 : vector<8x256xf32>
    %51 = vector.extract_strided_slice %10 {offsets = [0, 768], sizes = [8, 256], strides = [1, 1]} : vector<8x1024xf32> to vector<8x256xf32>
    %52 = arith.truncf %51 : vector<8x256xf32> to vector<8x256xbf16>
    %c3 = arith.constant 3 : index
    %c0_35 = arith.constant 0 : index
    %c0_36 = arith.constant 0 : index
    %53 = vector.load %arg5[%c3, %c0_35, %c0_36] : memref<4x256x256xbf16, #tpu.memory_space<vmem>>, vector<1x256x256xbf16>
    %54 = vector.shape_cast %53 : vector<1x256x256xbf16> to vector<256x256xbf16>
    %cst_37 = arith.constant dense<0.000000e+00> : vector<8x256xf32>
    %55 = tpu.matmul %52, %54, %cst_37 {dimension_numbers = #tpu.dot_dimension_numbers<[1], [0], [0], [1], [0, 0, 1, 1], [], []>} : vector<8x256xbf16>, vector<256x256xbf16>, vector<8x256xf32> -> vector<8x256xf32>
    %c3_38 = arith.constant 3 : index
    %c0_39 = arith.constant 0 : index
    %c0_40 = arith.constant 0 : index
    %56 = vector.load %arg6[%c3_38, %c0_39, %c0_40] : memref<4x1x256xf32, #tpu.memory_space<vmem>>, vector<1x1x256xf32>
    %57 = vector.shape_cast %56 : vector<1x1x256xf32> to vector<1x256xf32>
    %58 = vector.broadcast %57 : vector<1x256xf32> to vector<8x256xf32>
    %59 = arith.addf %55, %58 : vector<8x256xf32>
    %cst_41 = arith.constant 0.000000e+00 : f32
    %60 = vector.broadcast %cst_41 : f32 to vector<8x256xf32>
    %61 = arith.maximumf %59, %60 : vector<8x256xf32>
    %62 = arith.truncf %17 : vector<8x256xf32> to vector<8x256xbf16>
    %c2_42 = arith.constant 2 : index
    %c0_43 = arith.constant 0 : index
    %c0_44 = arith.constant 0 : index
    %63 = vector.load %arg5[%c2_42, %c0_43, %c0_44] : memref<4x256x256xbf16, #tpu.memory_space<vmem>>, vector<1x256x256xbf16>
    %64 = vector.shape_cast %63 : vector<1x256x256xbf16> to vector<256x256xbf16>
    %cst_45 = arith.constant dense<0.000000e+00> : vector<8x256xf32>
    %65 = tpu.matmul %62, %64, %cst_45 {dimension_numbers = #tpu.dot_dimension_numbers<[1], [0], [0], [1], [0, 0, 1, 1], [], []>} : vector<8x256xbf16>, vector<256x256xbf16>, vector<8x256xf32> -> vector<8x256xf32>
    %c2_46 = arith.constant 2 : index
    %c0_47 = arith.constant 0 : index
    %c0_48 = arith.constant 0 : index
    %66 = vector.load %arg6[%c2_46, %c0_47, %c0_48] : memref<4x1x256xf32, #tpu.memory_space<vmem>>, vector<1x1x256xf32>
    %67 = vector.shape_cast %66 : vector<1x1x256xf32> to vector<1x256xf32>
    %68 = vector.broadcast %67 : vector<1x256xf32> to vector<8x256xf32>
    %69 = arith.addf %65, %68 : vector<8x256xf32>
    %cst_49 = arith.constant 0.000000e+00 : f32
    %70 = vector.broadcast %cst_49 : f32 to vector<8x256xf32>
    %71 = arith.maximumf %69, %70 : vector<8x256xf32>
    %72 = arith.truncf %28 : vector<8x256xf32> to vector<8x256xbf16>
    %73 = arith.truncf %39 : vector<8x256xf32> to vector<8x256xbf16>
    %74 = arith.truncf %50 : vector<8x256xf32> to vector<8x256xbf16>
    %75 = arith.truncf %61 : vector<8x256xf32> to vector<8x256xbf16>
    %76 = arith.truncf %71 : vector<8x256xf32> to vector<8x256xbf16>
    %77 = tpu.concatenate %72, %73, %74, %75, %76 in 1 : vector<8x256xbf16>, vector<8x256xbf16>, vector<8x256xbf16>, vector<8x256xbf16>, vector<8x256xbf16> -> vector<8x1280xbf16>
    %c0_50 = arith.constant 0 : index
    %c0_51 = arith.constant 0 : index
    %78 = vector.load %arg7[%c0_50, %c0_51] : memref<1280x128xbf16, #tpu.memory_space<vmem>>, vector<1280x128xbf16>
    %cst_52 = arith.constant dense<0.000000e+00> : vector<8x128xf32>
    %79 = tpu.matmul %77, %78, %cst_52 {dimension_numbers = #tpu.dot_dimension_numbers<[1], [0], [0], [1], [0, 0, 1, 1], [], []>} : vector<8x1280xbf16>, vector<1280x128xbf16>, vector<8x128xf32> -> vector<8x128xf32>
    %c0_53 = arith.constant 0 : index
    %c0_54 = arith.constant 0 : index
    %80 = vector.load %arg8[%c0_53, %c0_54] : memref<1x128xf32, #tpu.memory_space<vmem>>, vector<1x128xf32>
    %81 = vector.broadcast %80 : vector<1x128xf32> to vector<8x128xf32>
    %82 = arith.addf %79, %81 : vector<8x128xf32>
    %83 = tpu.iota {dimensions = array<i32: 1>} : vector<8x128xi32>
    %c8_i32 = arith.constant 8 : i32
    %84 = vector.broadcast %c8_i32 : i32 to vector<8x128xi32>
    %85 = arith.cmpi slt, %83, %84 : vector<8x128xi32>
    %c8_i32_55 = arith.constant 8 : i32
    %86 = vector.broadcast %c8_i32_55 : i32 to vector<8x128xi32>
    %87 = arith.cmpi sge, %83, %86 : vector<8x128xi32>
    %c16_i32 = arith.constant 16 : i32
    %88 = vector.broadcast %c16_i32 : i32 to vector<8x128xi32>
    %89 = arith.cmpi slt, %83, %88 : vector<8x128xi32>
    %90 = arith.andi %87, %89 : vector<8x128xi1>
    %c16_i32_56 = arith.constant 16 : i32
    %91 = vector.broadcast %c16_i32_56 : i32 to vector<8x128xi32>
    %92 = arith.cmpi sge, %83, %91 : vector<8x128xi32>
    %c24_i32 = arith.constant 24 : i32
    %93 = vector.broadcast %c24_i32 : i32 to vector<8x128xi32>
    %94 = arith.cmpi slt, %83, %93 : vector<8x128xi32>
    %95 = arith.andi %92, %94 : vector<8x128xi1>
    %c24_i32_57 = arith.constant 24 : i32
    %96 = vector.broadcast %c24_i32_57 : i32 to vector<8x128xi32>
    %97 = arith.cmpi sge, %83, %96 : vector<8x128xi32>
    %c32_i32 = arith.constant 32 : i32
    %98 = vector.broadcast %c32_i32 : i32 to vector<8x128xi32>
    %99 = arith.cmpi slt, %83, %98 : vector<8x128xi32>
    %100 = arith.andi %97, %99 : vector<8x128xi1>
    %c34_i32 = arith.constant 34 : i32
    %101 = vector.broadcast %c34_i32 : i32 to vector<8x128xi32>
    %102 = arith.cmpi sge, %83, %101 : vector<8x128xi32>
    %103 = vector.extract_strided_slice %82 {offsets = [0, 34], sizes = [8, 1], strides = [1, 1]} : vector<8x128xf32> to vector<8x1xf32>
    %104 = vector.extract_strided_slice %82 {offsets = [0, 35], sizes = [8, 1], strides = [1, 1]} : vector<8x128xf32> to vector<8x1xf32>
    %105 = vector.extract_strided_slice %82 {offsets = [0, 0], sizes = [8, 8], strides = [1, 1]} : vector<8x128xf32> to vector<8x8xf32>
    %cst_58 = arith.constant dense<0.000000e+00> : vector<8xf32>
    %106 = vector.multi_reduction <add>, %105, %cst_58 [1] : vector<8x8xf32> to vector<8xf32>
    %107 = vector.shape_cast %106 : vector<8xf32> to vector<8x1xf32>
    %cst_59 = arith.constant 8.000000e+00 : f32
    %108 = vector.broadcast %cst_59 : f32 to vector<8x1xf32>
    %109 = arith.divf %107, %108 : vector<8x1xf32>
    %110 = vector.extract_strided_slice %82 {offsets = [0, 8], sizes = [8, 8], strides = [1, 1]} : vector<8x128xf32> to vector<8x8xf32>
    %cst_60 = arith.constant dense<0.000000e+00> : vector<8xf32>
    %111 = vector.multi_reduction <add>, %110, %cst_60 [1] : vector<8x8xf32> to vector<8xf32>
    %112 = vector.shape_cast %111 : vector<8xf32> to vector<8x1xf32>
    %cst_61 = arith.constant 8.000000e+00 : f32
    %113 = vector.broadcast %cst_61 : f32 to vector<8x1xf32>
    %114 = arith.divf %112, %113 : vector<8x1xf32>
    %115 = vector.extract_strided_slice %82 {offsets = [0, 16], sizes = [8, 8], strides = [1, 1]} : vector<8x128xf32> to vector<8x8xf32>
    %cst_62 = arith.constant dense<0xFF800000> : vector<8xf32>
    %116 = vector.multi_reduction <maximumf>, %115, %cst_62 [1] : vector<8x8xf32> to vector<8xf32>
    %117 = vector.shape_cast %116 : vector<8xf32> to vector<8x1xf32>
    %118 = vector.broadcast %117 : vector<8x1xf32> to vector<8x8xf32>
    %119 = arith.subf %115, %118 : vector<8x8xf32>
    %120 = math.exp %119 : vector<8x8xf32>
    %cst_63 = arith.constant dense<0.000000e+00> : vector<8xf32>
    %121 = vector.multi_reduction <add>, %120, %cst_63 [1] : vector<8x8xf32> to vector<8xf32>
    %122 = vector.shape_cast %121 : vector<8xf32> to vector<8x1xf32>
    %123 = tpu.reciprocal %122 : vector<8x1xf32> -> vector<8x1xf32>
    %124 = math.log %122 : vector<8x1xf32>
    %125 = arith.subf %103, %109 : vector<8x1xf32>
    %cst_64 = arith.constant 0.000000e+00 : f32
    %126 = vector.shape_cast %125 : vector<8x1xf32> to vector<8x1xf32>
    %127 = vector.broadcast %126 : vector<8x1xf32> to vector<8x128xf32>
    %128 = vector.broadcast %cst_64 : f32 to vector<8x128xf32>
    %129 = arith.select %85, %127, %128 : vector<8x128xi1>, vector<8x128xf32>
    %130 = arith.subf %104, %114 : vector<8x1xf32>
    %cst_65 = arith.constant 0.000000e+00 : f32
    %131 = vector.shape_cast %130 : vector<8x1xf32> to vector<8x1xf32>
    %132 = vector.broadcast %131 : vector<8x1xf32> to vector<8x128xf32>
    %133 = vector.broadcast %cst_65 : f32 to vector<8x128xf32>
    %134 = arith.select %90, %132, %133 : vector<8x128xi1>, vector<8x128xf32>
    %135 = arith.addf %129, %134 : vector<8x128xf32>
    %136 = arith.ori %95, %100 : vector<8x128xi1>
    %cst_66 = arith.constant 0.000000e+00 : f32
    %137 = vector.shape_cast %117 : vector<8x1xf32> to vector<8x1xf32>
    %138 = vector.broadcast %137 : vector<8x1xf32> to vector<8x128xf32>
    %139 = vector.broadcast %cst_66 : f32 to vector<8x128xf32>
    %140 = arith.select %136, %138, %139 : vector<8x128xi1>, vector<8x128xf32>
    %141 = arith.subf %135, %140 : vector<8x128xf32>
    %142 = arith.addf %82, %141 : vector<8x128xf32>
    %143 = math.exp %142 : vector<8x128xf32>
    %144 = vector.broadcast %123 : vector<8x1xf32> to vector<8x128xf32>
    %145 = arith.mulf %143, %144 : vector<8x128xf32>
    %146 = vector.broadcast %124 : vector<8x1xf32> to vector<8x128xf32>
    %147 = arith.subf %142, %146 : vector<8x128xf32>
    %148 = arith.select %100, %147, %142 : vector<8x128xi1>, vector<8x128xf32>
    %149 = arith.select %95, %145, %148 : vector<8x128xi1>, vector<8x128xf32>
    %cst_67 = arith.constant 0.000000e+00 : f32
    %150 = vector.broadcast %cst_67 : f32 to vector<8x128xf32>
    %151 = arith.select %102, %150, %149 : vector<8x128xi1>, vector<8x128xf32>
    %c0_68 = arith.constant 0 : index
    %c0_69 = arith.constant 0 : index
    %152 = vector.load %arg9[%c0_68, %c0_69] : memref<8x128xf32, #tpu.memory_space<vmem>>, vector<8x128xf32>
    tpu.vector_store %arg9[%c0_68, %c0_69], %151 {strides = array<i32>} : memref<8x128xf32, #tpu.memory_space<vmem>>, vector<8x128xf32>,
    return
  }
  func.func @transform_0(%arg0: i32) -> (i32, i32) {
    %c0_i32 = arith.constant 0 : i32
    %c0_i32_0 = arith.constant 0 : i32
    return %arg0, %c0_i32 : i32, i32
  }
  func.func @transform_1(%arg0: i32) -> (i32, i32) {
    %c0_i32 = arith.constant 0 : i32
    %c0_i32_0 = arith.constant 0 : i32
    return %arg0, %c0_i32 : i32, i32
  }
  func.func @transform_2(%arg0: i32) -> (i32, i32) {
    %c0_i32 = arith.constant 0 : i32
    %c0_i32_0 = arith.constant 0 : i32
    %c0_i32_1 = arith.constant 0 : i32
    return %c0_i32, %c0_i32_0 : i32, i32
  }
  func.func @transform_3(%arg0: i32) -> (i32, i32) {
    %c0_i32 = arith.constant 0 : i32
    %c0_i32_0 = arith.constant 0 : i32
    %c0_i32_1 = arith.constant 0 : i32
    return %c0_i32, %c0_i32_0 : i32, i32
  }
  func.func @transform_4(%arg0: i32) -> (i32, i32, i32) {
    %c0_i32 = arith.constant 0 : i32
    %c0_i32_0 = arith.constant 0 : i32
    %c0_i32_1 = arith.constant 0 : i32
    %c0_i32_2 = arith.constant 0 : i32
    return %c0_i32, %c0_i32_0, %c0_i32_1 : i32, i32, i32
  }
  func.func @transform_5(%arg0: i32) -> (i32, i32, i32) {
    %c0_i32 = arith.constant 0 : i32
    %c0_i32_0 = arith.constant 0 : i32
    %c0_i32_1 = arith.constant 0 : i32
    %c0_i32_2 = arith.constant 0 : i32
    return %c0_i32, %c0_i32_0, %c0_i32_1 : i32, i32, i32
  }
  func.func @transform_6(%arg0: i32) -> (i32, i32) {
    %c0_i32 = arith.constant 0 : i32
    %c0_i32_0 = arith.constant 0 : i32
    %c0_i32_1 = arith.constant 0 : i32
    return %c0_i32, %c0_i32_0 : i32, i32
  }
  func.func @transform_7(%arg0: i32) -> (i32, i32) {
    %c0_i32 = arith.constant 0 : i32
    %c0_i32_0 = arith.constant 0 : i32
    %c0_i32_1 = arith.constant 0 : i32
    return %c0_i32, %c0_i32_0 : i32, i32
  }
  func.func @transform_8(%arg0: i32) -> (i32, i32) {
    %c0_i32 = arith.constant 0 : i32
    %c0_i32_0 = arith.constant 0 : i32
    return %arg0, %c0_i32 : i32, i32
  }
}

</mosaic_0001>

<bundles_post_ra>
// kernel: actor_critic_forward.1
= control target key start
LH: loop header
LB: loop body
LE: loop exit
PB: predicated region body
PF: predicated region fallthrough
CT: control target
= control target key end

     0   :  { %13 = vsyncpa [#allocation3], 0  ;;  %s3509_s0 = inlined_call_operand.vmem [shape: f32[8,32], index: 0, kind: input, shape index: {}]   ;;  %s3510_s1 = inlined_call_operand.vmem [shape: f32[8,32], index: 1, kind: input, shape index: {}]   ;;  %s3511_s2 = inlined_call_operand.hbm [shape: bf16[32,1024], index: 2, kind: input, shape index: {}]   ;;  %s3512_s3 = inlined_call_operand.vmem [shape: f32[1,1024], index: 3, kind: input, shape index: {}]   ;;  %s3513_s4 = inlined_call_operand.hbm [shape: bf16[4,256,256], index: 4, kind: input, shape index: {}]   ;;  %s3514_s5 = inlined_call_operand.vmem [shape: f32[4,1,256], index: 5, kind: input, shape index: {}]   ;;  %s3515_s6 = inlined_call_operand.hbm [shape: bf16[1280,128], index: 6, kind: input, shape index: {}]   ;;  %s3516_s7 = inlined_call_operand.vmem [shape: f32[1,128], index: 7, kind: input, shape index: {}]   ;;  %s3517_s8 = inlined_call_operand.vmem [shape: f32[8,128], index: 8, kind: output, shape index: {}]  }
   0x1   :  { %14 = vsyncpa [#allocation5], 0  ;;  %s3165_s27 = smov [#allocation4]   ;;  %s3095_s9 = scalar_lea.hbm %s3513_s4, 16384 }
   0x2   :  { %s38_s28 = sshll.u32 %s3165_s27, 4  ;;  %p3096_p0 = scmp.ne.s32.totalorder %s3513_s4, %s3095_s9  ;;  %s39_s28 = int_to_ptr.vmem [resolvable:$true] %s38_s28 }
   0x3   :  { %p3099_p1 = scmp.lt.u32.totalorder %s3095_s9, %s3513_s4 }
   0x5   :  { %p3101_p2 = pnand %p3099_p1, %p3096_p0 }
   0x7   :  { %3104 = shalt.err (!%p3101_p2)
}
   0x8   :  { %s3105_s14 = scalar_lea.vmem %s39_s28, 16384  ;;  %p3110_p4 = scmp.lt.s32.totalorder %s39_s28, %s39_s28 }
   0x9   :  { %p3106_p3 = scmp.ne.s32.totalorder %s39_s28, %s3105_s14  ;;  %p3111_p5 = scmp.lt.s32.totalorder %s3105_s14, %s3105_s14 }
   0xb   :  { %p3112_p6 = por %p3111_p5, %p3110_p4 }
   0xd   :  { %p3113_p7 = pnand %p3112_p6, %p3106_p3 }
   0xf   :  { %3116 = shalt.err (!%p3113_p7)
}
  0x10   :  { %s3166_s15 = smov 128   ;;  %s3167_s16 = smov 8  }
  0x11   :  { %44 = dma.hbm_to_vmem [thread:$0]  %s3513_s4, 16384, %s39_s28, [#allocation5], %s3166_s15, %s3166_s15, %s3167_s16  }
  0x12   :  { %s3168_s19 = smov [#allocation2]   ;;  %s3117_s23 = scalar_lea.hbm %s3511_s2, 2048 }
  0x13   :  { %s24_s20 = sshll.u32 %s3168_s19, 4  ;;  %p3118_p8 = scmp.ne.s32.totalorder %s3511_s2, %s3117_s23  ;;  %s25_s20 = int_to_ptr.vmem [resolvable:$true] %s24_s20 }
  0x14   :  { %p3121_p9 = scmp.lt.u32.totalorder %s3117_s23, %s3511_s2 }
  0x16   :  { %p3123_p10 = pnand %p3121_p9, %p3118_p8 }
  0x18   :  { %3126 = shalt.err (!%p3123_p10)
}
  0x19   :  { %s3127_s29 = scalar_lea.vmem %s25_s20, 2048  ;;  %p3132_p12 = scmp.lt.s32.totalorder %s25_s20, %s25_s20 }
  0x1a   :  { %p3128_p11 = scmp.ne.s32.totalorder %s25_s20, %s3127_s29  ;;  %p3133_p13 = scmp.lt.s32.totalorder %s3127_s29, %s3127_s29 }
  0x1c   :  { %p3134_p0 = por %p3133_p13, %p3132_p12 }
  0x1e   :  { %p3135_p1 = pnand %p3134_p0, %p3128_p11 }
  0x20   :  { %3138 = shalt.err (!%p3135_p1)
}
  0x21   :  { %s3169_s4 = smov 512   ;;  %s3170_s28 = smov 32  }
  0x22   :  { %30 = dma.hbm_to_vmem [thread:$0]  %s3511_s2, 2048, %s25_s20, [#allocation3], %s3169_s4, %s3169_s4, %s3170_s28  }
  0x23   :  { %s3171_s10 = smov [#allocation6]   ;;  %s3139_s14 = scalar_lea.hbm %s3515_s6, 10240 }
  0x24   :  { %s52_s11 = sshll.u32 %s3171_s10, 4  ;;  %p3140_p2 = scmp.ne.s32.totalorder %s3515_s6, %s3139_s14  ;;  %s53_s11 = int_to_ptr.vmem [resolvable:$true] %s52_s11 }
  0x25   :  { %p3143_p3 = scmp.lt.u32.totalorder %s3139_s14, %s3515_s6 }
  0x27   :  { %p3145_p4 = pnand %p3143_p3, %p3140_p2 }
  0x29   :  { %3148 = shalt.err (!%p3145_p4)
}
  0x2a   :  { %s3149_s19 = scalar_lea.vmem %s53_s11, 10240  ;;  %p3154_p6 = scmp.lt.s32.totalorder %s53_s11, %s53_s11 }
  0x2b   :  { %p3150_p5 = scmp.ne.s32.totalorder %s53_s11, %s3149_s19  ;;  %p3155_p7 = scmp.lt.s32.totalorder %s3149_s19, %s3149_s19 }
  0x2d   :  { %p3156_p8 = por %p3155_p7, %p3154_p6 }
  0x2f   :  { %p3157_p9 = pnand %p3156_p8, %p3150_p5 }
  0x31   :  { %3160 = shalt.err (!%p3157_p9)
}
  0x32   :  { %s3172_s2 = smov 64   ;;  %s3173_s20 = smov 4  }
  0x33   :  { %58 = dma.hbm_to_vmem [thread:$0]  %s3515_s6, 10240, %s53_s11, [#allocation5], %s3172_s2, %s3172_s2, %s3173_s20  }
  0x34   :  { %3161 = dma.done.wait [#allocation3], 2048  }
  0x35   :  { %3162 = vsyncadd [#allocation3], 4294965248 }
  0x36   :  { %3163 = dma.done.wait [#allocation5], 26624  }
  0x37   :  { %3164 = vsyncadd [#allocation5], 4294940672  ;;  %v3174_v0 = vmov 0   ;;  %v75_v1 = vld [vmem:[#allocation2] sm:$0xff]  ;;  %v76_v8 = vld [vmem:[#allocation2 + $0x8] sm:$0xff]  ;;  %vm213_vm0 = vcmask 261120  }
  0x38   :  { %249 = vmatprep.mubr.bf16.mxu0 %v3174_v0  ;;  %372 = vmatprep.mubr.bf16.mxu1 %v3174_v0  ;;  %v79_v2 = vld [vmem:[#allocation2 + $0x20] sm:$0xff]  ;;  %v80_v9 = vld [vmem:[#allocation2 + $0x28] sm:$0xff]  ;;  %v78_v12 = vld [vmem:[#allocation2 + $0x18] sm:$0xff]  ;;  %vm2402_vm1 = vcmask 195712   ;;  %vm2388_vm2 = vcmask 64512   ;;  %s3177_s13 = smov 112  }
  0x39   :  { %v83_v3 = vld [vmem:[#allocation2 + $0x40] sm:$0xff]  ;;  %v2453_v4 = vcombine.high %v75_v1, %v79_v2  ;;  %v2452_v5 = vcombine.low %v75_v1, %v79_v2  ;;  %v82_v13 = vld [vmem:[#allocation2 + $0x38] sm:$0xff]  ;;  %v2455_v14 = vcombine.high %v76_v8, %v80_v9  ;;  %v84_v15 = vld [vmem:[#allocation2 + $0x48] sm:$0xff]  ;;  %v2454_v23 = vcombine.low %v76_v8, %v80_v9 }
  0x3a   :  { %v87_v6 = vld [vmem:[#allocation2 + $0x60] sm:$0xff]  ;;  %v2459_v16 = vcombine.high %v78_v12, %v82_v13  ;;  %v2458_v17 = vcombine.low %v78_v12, %v82_v13  ;;  %v86_v18 = vld [vmem:[#allocation2 + $0x58] sm:$0xff]  ;;  %v88_v20 = vld [vmem:[#allocation2 + $0x68] sm:$0xff] }
  0x3b   :  { %v2461_v7 = vcombine.high %v83_v3, %v87_v6  ;;  %217 = vmatprep.subr.bf16.mxu0 %v2453_v4  ;;  %v2460_v10 = vcombine.low %v83_v3, %v87_v6  ;;  %v71_v11 = vld [vmem:[%s3509_s0] sm:$0xff]  ;;  %v90_v19 = vld [vmem:[#allocation2 + $0x78] sm:$0xff]  ;;  %v2463_v24 = vcombine.high %v84_v15, %v88_v20  ;;  %v77_v25 = vld [vmem:[#allocation2 + $0x10] sm:$0xff]  ;;  %v2462_v29 = vcombine.low %v84_v15, %v88_v20 }
  0x3c   :  { %218 = vmatpush1.bf16.msra.mxu0 %v2452_v5  ;;  %v2467_v21 = vcombine.high %v86_v18, %v90_v19  ;;  %v72_v22 = vpack.c.bf16 %v71_v11, %v71_v11  ;;  %340 = vmatprep.subr.bf16.mxu1 %v2459_v16  ;;  %v81_v26 = vld [vmem:[#allocation2 + $0x30] sm:$0xff]  ;;  %v2466_v27 = vcombine.low %v86_v18, %v90_v19  ;;  %v2817_v28 = vld [vmem:[#allocation4 + $0x4] ss:$8 sps:$4 sm:$0xff]   ;;  %v2815_v33 = vld [vmem:[#allocation4] ss:$8 sps:$4 sm:$0xff]  }
  0x3d   :  { %219 = vmatprep.subr.bf16.mxu0 %v2461_v7  ;;  %341 = vmatpush1.bf16.msra.mxu1 %v2458_v17  ;;  %v85_v30 = vld [vmem:[#allocation2 + $0x50] sm:$0xff]  ;;  %v2457_v31 = vcombine.high %v77_v25, %v81_v26  ;;  %v2456_v35 = vcombine.low %v77_v25, %v81_v26  ;;  %v2823_v38 = vld [vmem:[#allocation4 + $0x24] ss:$8 sps:$4 sm:$0xff]   ;;  %v2821_v40 = vld [vmem:[#allocation4 + $0x20] ss:$8 sps:$4 sm:$0xff]  }
  0x3e   :  { %342 = vmatprep.subr.bf16.mxu1 %v2467_v21  ;;  %v89_v32 = vld [vmem:[#allocation2 + $0x70] sm:$0xff]  ;;  %v2835_v43 = vld [vmem:[#allocation4 + $0x44] ss:$8 sps:$4 sm:$0xff]   ;;  %v2833_v46 = vld [vmem:[#allocation4 + $0x40] ss:$8 sps:$4 sm:$0xff]  }
  0x3f   :  { %v2820_v34 = vld [vmem:[#allocation4 + $0x14] ss:$8 sps:$4 sm:$0xff]   ;;  %v2465_v36 = vcombine.high %v85_v30, %v89_v32  ;;  %v2818_v37 = vld [vmem:[#allocation4 + $0x10] ss:$8 sps:$4 sm:$0xff]   ;;  %v2464_v39 = vcombine.low %v85_v30, %v89_v32  ;;  %v73_v44 = vld [vmem:[%s3510_s1] sm:$0xff] }
  0x40   :  { %220 = vmatpush1.bf16.msra.mxu0 %v2460_v10  ;;  %v2829_v41 = vld [vmem:[#allocation4 + $0x34] ss:$8 sps:$4 sm:$0xff]   ;;  %v2827_v42 = vld [vmem:[#allocation4 + $0x30] ss:$8 sps:$4 sm:$0xff]   ;;  %v2826_v45 = vld [vmem:[#allocation4 + $0x104] ss:$8 sps:$4 sm:$0xff]   ;;  %v74_v48 = vpack.c.bf16 %v73_v44, %v73_v44 }
  0x41   :  { %258 = vmatprep.subr.bf16.mxu0 %v2455_v14  ;;  %343 = vmatpush1.bf16.msra.mxu1 %v2466_v27  ;;  %v2841_v47 = vld [vmem:[#allocation4 + $0x54] ss:$8 sps:$4 sm:$0xff]   ;;  %v2824_v49 = vld [vmem:[#allocation4 + $0x100] ss:$8 sps:$4 sm:$0xff]   ;;  %v2839_v51 = vld [vmem:[#allocation4 + $0x50] ss:$8 sps:$4 sm:$0xff]  }
  0x42   :  { %677 = vmatprep.subr.bf16.mxu1 %v2817_v28  ;;  %v2832_v50 = vld [vmem:[#allocation4 + $0x114] ss:$8 sps:$4 sm:$0xff]   ;;  %v2847_v52 = vld [vmem:[#allocation4 + $0x64] ss:$8 sps:$4 sm:$0xff]   ;;  %v2830_v53 = vld [vmem:[#allocation4 + $0x110] ss:$8 sps:$4 sm:$0xff]  }
  0x43   :  { %2468 = vmatmul.mubr.msk.bf16.vlgmr.msra.gmra.mrb[0].mxu0 %vm213_vm0, %v72_v22  ;;  %v2838_v54 = vld [vmem:[#allocation4 + $0x124] ss:$8 sps:$4 sm:$0xff]   ;;  %v2845_v55 = vld [vmem:[#allocation4 + $0x60] ss:$8 sps:$4 sm:$0xff]   ;;  %v2853_v56 = vld [vmem:[#allocation4 + $0x74] ss:$8 sps:$4 sm:$0xff]  }
  0x44   :  { %259 = vmatpush1.bf16.msra.mxu0 %v2454_v23  ;;  %290 = vmatprep.mubr.bf16.mxu0 %v3174_v0  ;;  %v2836_v57 = vld [vmem:[#allocation4 + $0x120] ss:$8 sps:$4 sm:$0xff]   ;;  %v2844_v58 = vld [vmem:[#allocation4 + $0x134] ss:$8 sps:$4 sm:$0xff]   ;;  %v2851_v59 = vld [vmem:[#allocation4 + $0x70] ss:$8 sps:$4 sm:$0xff]  }
  0x45   :  { %260 = vmatprep.subr.bf16.mxu0 %v2463_v24  ;;  %2471 = vmatmul.mubr.msk.bf16.vlgmr.msra.gmra.mrb[0].mxu1 %vm213_vm0, %v72_v22  ;;  %v2859_v60 = vld [vmem:[#allocation4 + $0x84] ss:$8 sps:$4 sm:$0xff]   ;;  %v2842_v61 = vld [vmem:[#allocation4 + $0x130] ss:$8 sps:$4 sm:$0xff]   ;;  %v2857_v63 = vld [vmem:[#allocation4 + $0x80] ss:$8 sps:$4 sm:$0xff]  }
  0x46   :  { %678 = vmatpush1.bf16.msra.mxu1 %v2815_v33  ;;  %v2850_v62 = vld [vmem:[#allocation4 + $0x144] ss:$8 sps:$4 sm:$0xff]   ;;  %v2848_v1 = vld [vmem:[#allocation4 + $0x140] ss:$8 sps:$4 sm:$0xff]   ;;  %v2856_v2 = vld [vmem:[#allocation4 + $0x154] ss:$8 sps:$4 sm:$0xff]  }
  0x47   :  { %679 = vmatprep.subr.bf16.mxu1 %v2820_v34  ;;  %v2863_v3 = vld [vmem:[#allocation4 + $0x90] ss:$8 sps:$4 sm:$0xff]   ;;  %v2871_v4 = vld [vmem:[#allocation4 + $0xa4] ss:$8 sps:$4 sm:$0xff]   ;;  %v2869_v7 = vld [vmem:[#allocation4 + $0xa0] ss:$8 sps:$4 sm:$0xff]  }
  0x48   :  { %261 = vmatpush1.bf16.msra.mxu0 %v2462_v29  ;;  %v2854_v5 = vld [vmem:[#allocation4 + $0x150] ss:$8 sps:$4 sm:$0xff]   ;;  %v2862_v6 = vld [vmem:[#allocation4 + $0x164] ss:$8 sps:$4 sm:$0xff]   ;;  %v2877_v8 = vld [vmem:[#allocation4 + $0xb4] ss:$8 sps:$4 sm:$0xff]  }
  0x49   :  { %299 = vmatprep.subr.bf16.mxu0 %v2457_v31  ;;  %v2860_v9 = vld [vmem:[#allocation4 + $0x160] ss:$8 sps:$4 sm:$0xff]   ;;  %v2868_v10 = vld [vmem:[#allocation4 + $0x174] ss:$8 sps:$4 sm:$0xff]   ;;  %v2875_v11 = vld [vmem:[#allocation4 + $0xb0] ss:$8 sps:$4 sm:$0xff]  }
  0x4a   :  { %680 = vmatpush1.bf16.msra.mxu1 %v2818_v37  ;;  %v2883_v12 = vld [vmem:[#allocation4 + $0xc4] ss:$8 sps:$4 sm:$0xff]   ;;  %v2866_v13 = vld [vmem:[#allocation4 + $0x170] ss:$8 sps:$4 sm:$0xff]   ;;  %v2881_v15 = vld [vmem:[#allocation4 + $0xc0] ss:$8 sps:$4 sm:$0xff]  }
  0x4b   :  { %2469 = vmatmul.mubr.msk.bf16.vlgmr.msra.gmra.mrb[4].mxu0 %vm213_vm0, %v72_v22  ;;  %681 = vmatprep.subr.bf16.mxu1 %v2823_v38  ;;  %v2874_v14 = vld [vmem:[#allocation4 + $0x184] ss:$8 sps:$4 sm:$0xff]   ;;  %v2889_v16 = vld [vmem:[#allocation4 + $0xd4] ss:$8 sps:$4 sm:$0xff]   ;;  %v2872_v17 = vld [vmem:[#allocation4 + $0x180] ss:$8 sps:$4 sm:$0xff]  }
  0x4c   :  { %300 = vmatpush1.bf16.msra.mxu0 %v2456_v35  ;;  %331 = vmatprep.mubr.bf16.mxu0 %v3174_v0  ;;  %v2880_v18 = vld [vmem:[#allocation4 + $0x194] ss:$8 sps:$4 sm:$0xff]   ;;  %v2887_v19 = vld [vmem:[#allocation4 + $0xd0] ss:$8 sps:$4 sm:$0xff]   ;;  %v2886_v21 = vld [vmem:[#allocation4 + $0x1a4] ss:$8 sps:$4 sm:$0xff]  }
  0x4d   :  { %301 = vmatprep.subr.bf16.mxu0 %v2465_v36  ;;  %v2878_v20 = vld [vmem:[#allocation4 + $0x190] ss:$8 sps:$4 sm:$0xff]   ;;  %v2892_v23 = vld [vmem:[#allocation4 + $0x1b4] ss:$8 sps:$4 sm:$0xff]   ;;  %v2895_v25 = vld [vmem:[#allocation4 + $0xe4] ss:$8 sps:$4 sm:$0xff]  }
  0x4e   :  { %682 = vmatpush1.bf16.msra.mxu1 %v2821_v40  ;;  %v2890_v24 = vld [vmem:[#allocation4 + $0x1b0] ss:$8 sps:$4 sm:$0xff]   ;;  %v2898_v26 = vld [vmem:[#allocation4 + $0x1c4] ss:$8 sps:$4 sm:$0xff]   ;;  %v2893_v27 = vld [vmem:[#allocation4 + $0xe0] ss:$8 sps:$4 sm:$0xff]  }
  0x4f   :  { %683 = vmatprep.subr.bf16.mxu1 %v2829_v41  ;;  %v2896_v28 = vld [vmem:[#allocation4 + $0x1c0] ss:$8 sps:$4 sm:$0xff]   ;;  %v2901_v29 = vld [vmem:[#allocation4 + $0xf4] ss:$8 sps:$4 sm:$0xff]   ;;  %v2902_v32 = vld [vmem:[#allocation4 + $0x1d0] ss:$8 sps:$4 sm:$0xff]  }
  0x50   :  { %302 = vmatpush1.bf16.msra.mxu0 %v2464_v39  ;;  %v2904_v30 = vld [vmem:[#allocation4 + $0x1d4] ss:$8 sps:$4 sm:$0xff]   ;;  %v2907_v33 = vld [vmem:[#allocation4 + $0x1e4] ss:$8 sps:$4 sm:$0xff]   ;;  %v2911_v37 = vld [vmem:[#allocation4 + $0x1f0] ss:$8 sps:$4 sm:$0xff]  }
  0x51   :  { %428 = vmatprep.subr.bf16.mxu0 %v2457_v31  ;;  %v2899_v31 = vld [vmem:[#allocation4 + $0xf0] ss:$8 sps:$4 sm:$0xff]   ;;  %v3276_v34 = vld [vmem:[#allocation4 + $0x204] ss:$8 sps:$4 sm:$0xff]  }
  0x52   :  { %684 = vmatpush1.bf16.msra.mxu1 %v2827_v42  ;;  %v2922_v38 = vld [vmem:[#allocation4 + $0x304] ss:$8 sps:$4 sm:$0xff]  }
  0x53   :  { %2470 = vmatmul.mubr.msk.bf16.vlgmr.msra.gmra.mrb[8].mxu0 %vm213_vm0, %v72_v22  ;;  %685 = vmatprep.subr.bf16.mxu1 %v2835_v43  ;;  %v2884_v22 = vld [vmem:[#allocation4 + $0x1a0] ss:$8 sps:$4 sm:$0xff]  }
  0x54   :  { %429 = vmatpush1.bf16.msra.mxu0 %v2456_v35  ;;  %460 = vmatprep.mubr.bf16.mxu0 %v3174_v0  ;;  %v2865_v0 = vld [vmem:[#allocation4 + $0x94] ss:$8 sps:$4 sm:$0xff]   ;;  %v2905_v35 = vld [vmem:[#allocation4 + $0x1e0] ss:$8 sps:$4 sm:$0xff]  }
  0x55   :  { %430 = vmatprep.subr.bf16.mxu0 %v2465_v36  ;;  %v2913_v36 = vld [vmem:[#allocation4 + $0x1f4] ss:$8 sps:$4 sm:$0xff]   ;;  %v3288_v42 = vld [vmem:[%s3512_s3] sm:$0xff] }
  0x56   :  { %686 = vmatpush1.bf16.msra.mxu1 %v2833_v46 }
  0x57   :  { %687 = vmatprep.subr.bf16.mxu1 %v2841_v47 }
  0x58   :  { %431 = vmatpush1.bf16.msra.mxu0 %v2464_v39  ;;  %v93_v39 = vlaneseq }
  0x59   :  { %928 = vmatprep.subr.bf16.mxu0 %v2826_v45 }
  0x5a   :  { %688 = vmatpush1.bf16.msra.mxu1 %v2839_v51  ;;  %v3280_v40 = vshrl.u32 %v93_v39, 7 }
  0x5b   :  { %2476 = vmatmul.mubr.msk.bf16.vlgmr.msra.gmra.mrb[12].mxu0 %vm213_vm0, %v74_v48  ;;  %689 = vmatprep.subr.bf16.mxu1 %v2847_v52 }
  0x5c   :  { %929 = vmatpush1.bf16.msra.mxu0 %v2824_v49  ;;  %v3283_v41 = vsub.s32 0, %v3280_v40  ;;  %v3291_v43 = vsub.s32 1, %v3280_v40  ;;  %v123_v47 = vsub.s32 7, %v3280_v40 }
  0x5d   :  { %930 = vmatprep.subr.bf16.mxu0 %v2832_v50  ;;  %v103_v50 = vsub.s32 2, %v3280_v40 }
  0x5e   :  { %690 = vmatpush1.bf16.msra.mxu1 %v2845_v55  ;;  %v96_v44 = vrot.slane %v3288_v42, %v3283_v41  ;;  %v100_v45 = vrot.slane %v3288_v42, %v3291_v43 }
  0x5f   :  { %691 = vmatprep.subr.bf16.mxu1 %v2853_v56 }
  0x60   :  { %931 = vmatpush1.bf16.msra.mxu0 %v2830_v53  ;;  %v107_v53 = vsub.s32 3, %v3280_v40 }
  0x61   :  { %932 = vmatprep.subr.bf16.mxu0 %v2838_v54 }
  0x62   :  { %692 = vmatpush1.bf16.msra.mxu1 %v2851_v59 }
  0x63   :  { %693 = vmatprep.subr.bf16.mxu1 %v2859_v60 }
  0x64   :  { %933 = vmatpush1.bf16.msra.mxu0 %v2836_v57  ;;  %v124_v57 = vrot.slane %v3288_v42, %v123_v47 }
  0x65   :  { %934 = vmatprep.subr.bf16.mxu0 %v2844_v58  ;;  %v104_v58 = vrot.slane %v3288_v42, %v103_v50 }
  0x66   :  { %694 = vmatpush1.bf16.msra.mxu1 %v2857_v63 }
  0x67   :  { %695 = vmatprep.subr.bf16.mxu1 %v2865_v0 }
  0x68   :  { %935 = vmatpush1.bf16.msra.mxu0 %v2842_v61  ;;  %v3304_v61 = vld [vmem:[#allocation4 + $0x200] ss:$8 sps:$4 sm:$0xff]  }
  0x69   :  { %936 = vmatprep.subr.bf16.mxu0 %v2850_v62  ;;  %v108_v62 = vrot.slane %v3288_v42, %v107_v53 }
  0x6a   :  { %696 = vmatpush1.bf16.msra.mxu1 %v2863_v3 }
  0x6b   :  { %697 = vmatprep.subr.bf16.mxu1 %v2871_v4 }
  0x6c   :  { %937 = vmatpush1.bf16.msra.mxu0 %v2848_v1  ;;  %v3307_v1 = vld [vmem:[#allocation4 + $0x214] ss:$8 sps:$4 sm:$0xff]  }
  0x6d   :  { %938 = vmatprep.subr.bf16.mxu0 %v2856_v2 }
  0x6e   :  { %698 = vmatpush1.bf16.msra.mxu1 %v2869_v7 }
  0x6f   :  { %699 = vmatprep.subr.bf16.mxu1 %v2877_v8 }
  0x70   :  { %939 = vmatpush1.bf16.msra.mxu0 %v2854_v5 }
  0x71   :  { %940 = vmatprep.subr.bf16.mxu0 %v2862_v6 }
  0x72   :  { %700 = vmatpush1.bf16.msra.mxu1 %v2875_v11  ;;  %v115_v11 = vsub.s32 5, %v3280_v40 }
  0x73   :  { %701 = vmatprep.subr.bf16.mxu1 %v2883_v12 }
  0x74   :  { %941 = vmatpush1.bf16.msra.mxu0 %v2860_v9  ;;  %v3310_v9 = vld [vmem:[#allocation4 + $0x210] ss:$8 sps:$4 sm:$0xff]  }
  0x75   :  { %942 = vmatprep.subr.bf16.mxu0 %v2868_v10 }
  0x76   :  { %702 = vmatpush1.bf16.msra.mxu1 %v2881_v15 }
  0x77   :  { %703 = vmatprep.subr.bf16.mxu1 %v2889_v16 }
  0x78   :  { %943 = vmatpush1.bf16.msra.mxu0 %v2866_v13  ;;  %v3314_v13 = vld [vmem:[#allocation4 + $0x224] ss:$8 sps:$4 sm:$0xff]  }
  0x79   :  { %944 = vmatprep.subr.bf16.mxu0 %v2874_v14 }
  0x7a   :  { %704 = vmatpush1.bf16.msra.mxu1 %v2887_v19  ;;  %v3317_v19 = vld [vmem:[#allocation4 + $0x220] ss:$8 sps:$4 sm:$0xff]  }
  0x7b   :  { %705 = vmatprep.subr.bf16.mxu1 %v2895_v25 }
  0x7c   :  { %945 = vmatpush1.bf16.msra.mxu0 %v2872_v17 }
  0x7d   :  { %946 = vmatprep.subr.bf16.mxu0 %v2880_v18 }
  0x7e   :  { %706 = vmatpush1.bf16.msra.mxu1 %v2893_v27  ;;  %v3326_v27 = vld [vmem:[#allocation4 + $0x230] ss:$8 sps:$4 sm:$0xff]  }
  0x7f   :  { %707 = vmatprep.subr.bf16.mxu1 %v2901_v29 }
  0x80   :  { %947 = vmatpush1.bf16.msra.mxu0 %v2878_v20  ;;  %v2920_v20 = vld [vmem:[#allocation4 + $0x300] ss:$8 sps:$4 sm:$0xff]  }
  0x81   :  { %948 = vmatprep.subr.bf16.mxu0 %v2886_v21  ;;  %v116_v21 = vrot.slane %v3288_v42, %v115_v11  ;;  %v2968_v11 = vld [vmem:[#allocation4 + $0x380] ss:$8 sps:$4 sm:$0xff]  }
  0x82   :  { %708 = vmatpush1.bf16.msra.mxu1 %v2899_v31  ;;  %v3329_v31 = vld [vmem:[#allocation4 + $0x244] ss:$8 sps:$4 sm:$0xff]  }
  0x83   :  { %1179 = vmatprep.subr.bf16.mxu1 %v3276_v34 }
  0x84   :  { %949 = vmatpush1.bf16.msra.mxu0 %v2884_v22  ;;  %v3321_v22 = vld [vmem:[#allocation4 + $0x234] ss:$8 sps:$4 sm:$0xff]  }
  0x85   :  { %950 = vmatprep.subr.bf16.mxu0 %v2892_v23  ;;  %v2928_v23 = vld [vmem:[#allocation4 + $0x314] ss:$8 sps:$4 sm:$0xff]  }
  0x88   :  { %951 = vmatpush1.bf16.msra.mxu0 %v2890_v24 }
  0x89   :  { %952 = vmatprep.subr.bf16.mxu0 %v2898_v26 }
  0x8c   :  { %953 = vmatpush1.bf16.msra.mxu0 %v2896_v28  ;;  %v2926_v28 = vld [vmem:[#allocation4 + $0x310] ss:$8 sps:$4 sm:$0xff]  }
  0x8d   :  { %954 = vmatprep.subr.bf16.mxu0 %v2904_v30 }
  0x90   :  { %955 = vmatpush1.bf16.msra.mxu0 %v2902_v32  ;;  %v2934_v32 = vld [vmem:[#allocation4 + $0x324] ss:$8 sps:$4 sm:$0xff]  }
  0x91   :  { %956 = vmatprep.subr.bf16.mxu0 %v2907_v33 }
  0x94   :  { %957 = vmatpush1.bf16.msra.mxu0 %v2905_v35 }
  0x95   :  { %958 = vmatprep.subr.bf16.mxu0 %v2913_v36  ;;  %v3332_v36 = vld [vmem:[#allocation4 + $0x240] ss:$8 sps:$4 sm:$0xff]  }
  0x98   :  { %959 = vmatpush1.bf16.msra.mxu0 %v2911_v37  ;;  %v2932_v37 = vld [vmem:[#allocation4 + $0x320] ss:$8 sps:$4 sm:$0xff]  }
  0x99   :  { %1430 = vmatprep.subr.bf16.mxu0 %v2922_v38 }
 0x116   :  { %v251_v46 = vpop.f32.mrb[0].mxu0 }
 0x117   :  { %v252_v48 = vadd.f32 %v251_v46, %v96_v44  ;;  %v253_v49 = vpop.f32.mrb[1].mxu0  ;;  %v3335_v44 = vld [vmem:[#allocation4 + $0x254] ss:$8 sps:$4 sm:$0xff]  }
 0x118   :  { %v254_v51 = vadd.f32 %v253_v49, %v100_v45  ;;  %v255_v52 = vpop.f32.mrb[2].mxu0  ;;  %v3302_v59 = vpop.f32.mrb[0].mxu1  ;;  %v2940_v45 = vld [vmem:[#allocation4 + $0x334] ss:$8 sps:$4 sm:$0xff]   ;;  %v2938_v49 = vld [vmem:[#allocation4 + $0x330] ss:$8 sps:$4 sm:$0xff]  }
 0x119   :  { %v381_v54 = vmax.f32 %v252_v48, 0.0  ;;  %v256_v55 = vpop.f32.mrb[3].mxu0  ;;  %v376_v63 = vpop.f32.mrb[1].mxu1  ;;  %v3342_v48 = vld [vmem:[#allocation4 + $0x250] ss:$8 sps:$4 sm:$0xff]  }
 0x11a   :  { %v382_v56 = vmax.f32 %v254_v51, 0.0  ;;  %v378_v2 = vpop.f32.mrb[2].mxu1  ;;  %v377_v4 = vadd.f32 %v376_v63, %v124_v57  ;;  %v3345_v51 = vld [vmem:[#allocation4 + $0x264] ss:$8 sps:$4 sm:$0xff]   ;;  %v2944_v55 = vld [vmem:[#allocation4 + $0x340] ss:$8 sps:$4 sm:$0xff]  }
 0x11b   :  { %v471_v0 = vpack.c.bf16 %v381_v54, %v381_v54  ;;  %v379_v5 = vpop.f32.mrb[3].mxu1  ;;  %v2946_v52 = vld [vmem:[#allocation4 + $0x344] ss:$8 sps:$4 sm:$0xff]   ;;  %v3348_v54 = vld [vmem:[#allocation4 + $0x260] ss:$8 sps:$4 sm:$0xff]  }
 0x11c   :  { %v472_v60 = vpack.c.bf16 %v382_v56, %v382_v56  ;;  %v388_v16 = vmax.f32 %v377_v4, 0.0  ;;  %v3351_v56 = vld [vmem:[#allocation4 + $0x274] ss:$8 sps:$4 sm:$0xff]   ;;  %v2958_v63 = vld [vmem:[#allocation4 + $0x364] ss:$8 sps:$4 sm:$0xff]  }
 0x11d   :  { %v2952_v57 = vld [vmem:[#allocation4 + $0x354] ss:$8 sps:$4 sm:$0xff]   ;;  %v2956_v2 = vld [vmem:[#allocation4 + $0x360] ss:$8 sps:$4 sm:$0xff]   ;;  %v3366_v5 = vld [vmem:[#allocation4 + $0x290] ss:$8 sps:$4 sm:$0xff]  }
 0x11e   :  { %v292_v3 = vpop.f32.mrb[4].mxu0  ;;  %709 = vmatprep.mubr.bf16.mxu1 %v472_v60  ;;  %v1223_v25 = vpack.c.bf16 %v388_v16, %v388_v16  ;;  %v2950_v60 = vld [vmem:[#allocation4 + $0x350] ss:$8 sps:$4 sm:$0xff]   ;;  %v2964_v4 = vld [vmem:[#allocation4 + $0x374] ss:$8 sps:$4 sm:$0xff]  }
 0x11f   :  { %v293_v6 = vadd.f32 %v292_v3, %v104_v58  ;;  %v294_v7 = vpop.f32.mrb[5].mxu0  ;;  %710 = vmatmul.mubr.bf16.vlgmr.msra.gmra.mrb[4].mxu1 %v471_v0  ;;  %v3354_v58 = vld [vmem:[#allocation4 + $0x270] ss:$8 sps:$4 sm:$0xff]   ;;  %v3360_v0 = vld [vmem:[#allocation4 + $0x280] ss:$8 sps:$4 sm:$0xff]  }
 0x120   :  { %v295_v8 = vadd.f32 %v294_v7, %v108_v62  ;;  %1180 = vmatpush1.bf16.msra.mxu1 %v3304_v61  ;;  %v296_v10 = vpop.f32.mrb[6].mxu0  ;;  %v3357_v62 = vld [vmem:[#allocation4 + $0x284] ss:$8 sps:$4 sm:$0xff]   ;;  %v3363_v3 = vld [vmem:[#allocation4 + $0x294] ss:$8 sps:$4 sm:$0xff]  }
 0x121   :  { %v383_v12 = vmax.f32 %v293_v6, 0.0  ;;  %1181 = vmatprep.subr.bf16.mxu1 %v3307_v1  ;;  %v297_v14 = vpop.f32.mrb[7].mxu0  ;;  %v2962_v6 = vld [vmem:[#allocation4 + $0x370] ss:$8 sps:$4 sm:$0xff]   ;;  %v3369_v7 = vld [vmem:[#allocation4 + $0x2a4] ss:$8 sps:$4 sm:$0xff]  }
 0x122   :  { %v384_v15 = vmax.f32 %v295_v8, 0.0  ;;  %v2970_v8 = vld [vmem:[#allocation4 + $0x384] ss:$8 sps:$4 sm:$0xff]   ;;  %v3372_v10 = vld [vmem:[#allocation4 + $0x2a0] ss:$8 sps:$4 sm:$0xff]  }
 0x123   :  { %v720_v17 = vpack.c.bf16 %v383_v12, %v383_v12  ;;  %v3375_v12 = vld [vmem:[#allocation4 + $0x2b4] ss:$8 sps:$4 sm:$0xff]   ;;  %v2974_v16 = vld [vmem:[#allocation4 + $0x390] ss:$8 sps:$4 sm:$0xff]  }
 0x124   :  { %v721_v18 = vpack.c.bf16 %v384_v15, %v384_v15  ;;  %1182 = vmatpush1.bf16.msra.mxu1 %v3310_v9  ;;  %v2976_v14 = vld [vmem:[#allocation4 + $0x394] ss:$8 sps:$4 sm:$0xff]   ;;  %v3378_v15 = vld [vmem:[#allocation4 + $0x2b0] ss:$8 sps:$4 sm:$0xff]  }
 0x125   :  { %1183 = vmatprep.subr.bf16.mxu1 %v3314_v13 }
 0x126   :  { %960 = vmatprep.mubr.bf16.mxu0 %v721_v18  ;;  %v3323_v24 = vpop.f32.mrb[8].mxu0  ;;  %v2982_v18 = vld [vmem:[#allocation4 + $0x3a4] ss:$8 sps:$4 sm:$0xff]  }
 0x127   :  { %961 = vmatmul.mubr.bf16.vlgmr.msra.gmra.mrb[16].mxu0 %v720_v17  ;;  %v335_v26 = vpop.f32.mrb[9].mxu0  ;;  %v3381_v17 = vld [vmem:[#allocation4 + $0x2c4] ss:$8 sps:$4 sm:$0xff]  }
 0x128   :  { %1184 = vmatpush1.bf16.msra.mxu1 %v3317_v19  ;;  %1431 = vmatpush1.bf16.msra.mxu0 %v2920_v20  ;;  %v336_v29 = vadd.f32 %v335_v26, %v116_v21  ;;  %v337_v30 = vpop.f32.mrb[10].mxu0  ;;  %v111_v20 = vsub.s32 4, %v3280_v40  ;;  %v3385_v21 = vld [vmem:[#allocation4 + $0x2c0] ss:$8 sps:$4 sm:$0xff]   ;;  %v2988_v26 = vld [vmem:[#allocation4 + $0x3b4] ss:$8 sps:$4 sm:$0xff]  }
 0x129   :  { %1185 = vmatprep.subr.bf16.mxu1 %v3321_v22  ;;  %1432 = vmatprep.subr.bf16.mxu0 %v2928_v23  ;;  %v338_v33 = vpop.f32.mrb[11].mxu0  ;;  %v2980_v23 = vld [vmem:[#allocation4 + $0x3a0] ss:$8 sps:$4 sm:$0xff]   ;;  %v3397_v30 = vld [vmem:[#allocation4 + $0x2d0] ss:$8 sps:$4 sm:$0xff]  }
 0x12a   :  { %v386_v35 = vmax.f32 %v336_v29, 0.0  ;;  %1462 = vmatprep.mubr.bf16.mxu0 %v1223_v25  ;;  %v3388_v25 = vld [vmem:[#allocation4 + $0x2d4] ss:$8 sps:$4 sm:$0xff]   ;;  %v3394_v29 = vld [vmem:[%s3512_s3 + $0x4] sm:$0x3] }
 0x12b   :  { %v3400_v33 = vld [vmem:[#allocation4 + $0x2e4] ss:$8 sps:$4 sm:$0xff]  }
 0x12c   :  { %1186 = vmatpush1.bf16.msra.mxu1 %v3326_v27  ;;  %1433 = vmatpush1.bf16.msra.mxu0 %v2926_v28  ;;  %v972_v38 = vpack.c.bf16 %v386_v35, %v386_v35  ;;  %v112_v28 = vrot.slane %v3288_v42, %v111_v20  ;;  %v2994_v35 = vld [vmem:[#allocation4 + $0x3c4] ss:$8 sps:$4 sm:$0xff]   ;;  %v3012_v20 = vld [vmem:[#allocation6 + $0x10] sm:$0xff]  }
 0x12d   :  { %1187 = vmatprep.subr.bf16.mxu1 %v3329_v31  ;;  %1434 = vmatprep.subr.bf16.mxu0 %v2934_v32  ;;  %v2986_v32 = vld [vmem:[#allocation4 + $0x3b0] ss:$8 sps:$4 sm:$0xff]  }
 0x12e   :  { %1211 = vmatprep.mubr.bf16.mxu1 %v972_v38  ;;  %v3337_v46 = vpop.f32.mrb[12].mxu0  ;;  %v334_v38 = vadd.f32 %v3323_v24, %v112_v28  ;;  %v2998_v24 = vld [vmem:[#allocation4 + $0x3d0] ss:$8 sps:$4 sm:$0xff]  }
 0x12f   :  { %v3339_v47 = vpop.f32.mrb[13].mxu0  ;;  %v3059_v28 = vld [vmem:[#allocation6 + $0x170] sm:$0xff]  }
 0x130   :  { %1188 = vmatpush1.bf16.msra.mxu1 %v3332_v36  ;;  %1435 = vmatpush1.bf16.msra.mxu0 %v2932_v37  ;;  %v466_v50 = vpop.f32.mrb[14].mxu0  ;;  %v402_v37 = vrot.slane %v3394_v29, %v3291_v43 }
 0x131   :  { %1189 = vmatprep.subr.bf16.mxu1 %v3335_v44  ;;  %1436 = vmatprep.subr.bf16.mxu0 %v2940_v45  ;;  %v467_v53 = vpop.f32.mrb[15].mxu0  ;;  %v119_v45 = vsub.s32 6, %v3280_v40  ;;  %v2992_v50 = vld [vmem:[#allocation4 + $0x3c0] ss:$8 sps:$4 sm:$0xff]   ;;  %v3415_v40 = vld [vmem:[#allocation4 + $0x2f0] ss:$8 sps:$4 sm:$0xff]  }
 0x132   :  { %v3000_v53 = vld [vmem:[#allocation4 + $0x3d4] ss:$8 sps:$4 sm:$0xff]  }
 0x134   :  { %1190 = vmatpush1.bf16.msra.mxu1 %v3342_v48  ;;  %1437 = vmatpush1.bf16.msra.mxu0 %v2938_v49  ;;  %v3407_v49 = vld [vmem:[#allocation4 + $0x2e0] ss:$8 sps:$4 sm:$0xff]  }
 0x135   :  { %1191 = vmatprep.subr.bf16.mxu1 %v3345_v51  ;;  %1438 = vmatprep.subr.bf16.mxu0 %v2946_v52  ;;  %v3410_v52 = vld [vmem:[#allocation4 + $0x2f4] ss:$8 sps:$4 sm:$0xff]  }
 0x138   :  { %1192 = vmatpush1.bf16.msra.mxu1 %v3348_v54  ;;  %1439 = vmatpush1.bf16.msra.mxu0 %v2944_v55  ;;  %v465_v55 = vadd.f32 %v3339_v47, %v402_v37  ;;  %v3001_v47 = vld [vmem:[#allocation4 + $0x3e0] ss:$8 sps:$4 sm:$0xff]  }
 0x139   :  { %1193 = vmatprep.subr.bf16.mxu1 %v3351_v56  ;;  %1440 = vmatprep.subr.bf16.mxu0 %v2952_v57  ;;  %v385_v57 = vmax.f32 %v334_v38, 0.0 }
 0x13c   :  { %1194 = vmatpush1.bf16.msra.mxu1 %v3354_v58  ;;  %1441 = vmatpush1.bf16.msra.mxu0 %v2950_v60  ;;  %v120_v60 = vrot.slane %v3288_v42, %v119_v45  ;;  %v3006_v42 = vld [vmem:[#allocation4 + $0x3f4] ss:$8 sps:$4 sm:$0xff]  }
 0x13d   :  { %1195 = vmatprep.subr.bf16.mxu1 %v3357_v62  ;;  %1442 = vmatprep.subr.bf16.mxu0 %v2958_v63  ;;  %v3003_v63 = vld [vmem:[#allocation4 + $0x3e4] ss:$8 sps:$4 sm:$0xff]  }
 0x140   :  { %1196 = vmatpush1.bf16.msra.mxu1 %v3360_v0  ;;  %1443 = vmatpush1.bf16.msra.mxu0 %v2956_v2  ;;  %v470_v2 = vmax.f32 %v465_v55, 0.0 }
 0x141   :  { %1197 = vmatprep.subr.bf16.mxu1 %v3363_v3  ;;  %1444 = vmatprep.subr.bf16.mxu0 %v2964_v4  ;;  %v971_v4 = vpack.c.bf16 %v385_v57, %v385_v57 }
 0x144   :  { %1198 = vmatpush1.bf16.msra.mxu1 %v3366_v5  ;;  %1445 = vmatpush1.bf16.msra.mxu0 %v2962_v6  ;;  %v375_v6 = vadd.f32 %v3302_v59, %v120_v60  ;;  %v2509_v60 = vld [vmem:[%s3514_s5 + $0x2] sm:$0x3] }
 0x145   :  { %1199 = vmatprep.subr.bf16.mxu1 %v3369_v7  ;;  %1446 = vmatprep.subr.bf16.mxu0 %v2970_v8  ;;  %v1474_v8 = vpack.c.bf16 %v470_v2, %v470_v2  ;;  %v765_v2 = vrot.slane %v2509_v60, %v3291_v43 }
 0x148   :  { %1200 = vmatpush1.bf16.msra.mxu1 %v3372_v10  ;;  %1447 = vmatpush1.bf16.msra.mxu0 %v2968_v11  ;;  %v387_v11 = vmax.f32 %v375_v6, 0.0  ;;  %v3025_v6 = vld [vmem:[#allocation6 + $0xc8] sm:$0xff]  }
 0x149   :  { %1201 = vmatprep.subr.bf16.mxu1 %v3375_v12  ;;  %1448 = vmatprep.subr.bf16.mxu0 %v2976_v14  ;;  %v3004_v14 = vld [vmem:[#allocation4 + $0x3f0] ss:$8 sps:$4 sm:$0xff]  }
 0x14a   :  { %v1222_v59 = vpack.c.bf16 %v387_v11, %v387_v11 }
 0x14c   :  { %1202 = vmatpush1.bf16.msra.mxu1 %v3378_v15  ;;  %1449 = vmatpush1.bf16.msra.mxu0 %v2974_v16  ;;  %v3007_v16 = vld [vmem:[#allocation6 + $0x40] sm:$0xff]  }
 0x14d   :  { %1203 = vmatprep.subr.bf16.mxu1 %v3381_v17  ;;  %1450 = vmatprep.subr.bf16.mxu0 %v2982_v18  ;;  %v3008_v18 = vld [vmem:[#allocation6] sm:$0xff]  }
 0x150   :  { %1204 = vmatpush1.bf16.msra.mxu1 %v3385_v21  ;;  %1451 = vmatpush1.bf16.msra.mxu0 %v2980_v23  ;;  %v3053_v23 = vld [vmem:[#allocation6 + $0x120] sm:$0xff]  }
 0x151   :  { %1205 = vmatprep.subr.bf16.mxu1 %v3388_v25  ;;  %1452 = vmatprep.subr.bf16.mxu0 %v2988_v26  ;;  %v3057_v26 = vld [vmem:[#allocation6 + $0x128] sm:$0xff]  }
 0x154   :  { %1206 = vmatpush1.bf16.msra.mxu1 %v3397_v30  ;;  %1453 = vmatpush1.bf16.msra.mxu0 %v2986_v32  ;;  %v3065_v32 = vld [vmem:[#allocation6 + $0x138] sm:$0xff]  }
 0x155   :  { %1207 = vmatprep.subr.bf16.mxu1 %v3400_v33  ;;  %1454 = vmatprep.subr.bf16.mxu0 %v2994_v35  ;;  %v505_v35 = vld [vmem:[%s3514_s5] sm:$0x3] }
 0x156   :  { %v510_v37 = vrot.slane %v505_v35, %v3283_v41  ;;  %v514_v38 = vrot.slane %v505_v35, %v3291_v43 }
 0x158   :  { %1208 = vmatpush1.bf16.msra.mxu1 %v3407_v49  ;;  %1455 = vmatpush1.bf16.msra.mxu0 %v2992_v50 }
 0x159   :  { %1209 = vmatprep.subr.bf16.mxu1 %v3410_v52  ;;  %1456 = vmatprep.subr.bf16.mxu0 %v3000_v53 }
 0x15c   :  { %1210 = vmatpush1.bf16.msra.mxu1 %v3415_v40  ;;  %1457 = vmatpush1.bf16.msra.mxu0 %v2998_v24 }
 0x15d   :  { %1458 = vmatprep.subr.bf16.mxu0 %v3003_v63  ;;  %1475 = vmatprep.subr.bf16.mxu1 %v3276_v34  ;;  %v3009_v34 = vld [vmem:[#allocation6 + $0x48] sm:$0xff]   ;;  %v3024_v63 = vld [vmem:[#allocation6 + $0x80] sm:$0xff]  }
 0x15f   :  { %1212 = vmatmul.mubr.bf16.vlgmr.msra.gmra.mrb[8].mxu1 %v971_v4 }
 0x160   :  { %1459 = vmatpush1.bf16.msra.mxu0 %v3001_v47  ;;  %1476 = vmatpush1.bf16.msra.mxu1 %v3304_v61  ;;  %v3010_v61 = vld [vmem:[#allocation6 + $0x8] sm:$0xff]  }
 0x161   :  { %1460 = vmatprep.subr.bf16.mxu0 %v3006_v42  ;;  %1477 = vmatprep.subr.bf16.mxu1 %v3307_v1  ;;  %v3011_v1 = vld [vmem:[#allocation6 + $0x50] sm:$0xff]  }
 0x162   :  { %1507 = vmatprep.mubr.bf16.mxu1 %v1474_v8  ;;  %v3026_v8 = vld [vmem:[#allocation6 + $0x88] sm:$0xff]  }
 0x164   :  { %1461 = vmatpush1.bf16.msra.mxu0 %v3004_v14  ;;  %1478 = vmatpush1.bf16.msra.mxu1 %v3310_v9  ;;  %v3013_v9 = vld [vmem:[#allocation6 + $0x58] sm:$0xff]  }
 0x165   :  { %1479 = vmatprep.subr.bf16.mxu1 %v3314_v13  ;;  %2689 = vmatprep.subr.bf16.mxu0 %v3007_v16  ;;  %v3014_v13 = vld [vmem:[#allocation6 + $0x18] sm:$0xff]   ;;  %v3027_v16 = vld [vmem:[#allocation6 + $0xd0] sm:$0xff]  }
 0x167   :  { %1463 = vmatmul.mubr.bf16.vlgmr.msra.gmra.mrb[20].mxu0 %v1222_v59 }
 0x168   :  { %1480 = vmatpush1.bf16.msra.mxu1 %v3317_v19  ;;  %2690 = vmatpush3.bf16.msra.mxu0 %v3008_v18  ;;  %v3015_v19 = vld [vmem:[#allocation6 + $0x60] sm:$0xff]  }
 0x169   :  { %1481 = vmatprep.subr.bf16.mxu1 %v3321_v22  ;;  %2691 = vmatprep.subr.bf16.mxu0 %v3009_v34  ;;  %v3016_v22 = vld [vmem:[#allocation6 + $0x20] sm:$0xff]   ;;  %v3028_v34 = vld [vmem:[#allocation6 + $0x90] sm:$0xff]  }
 0x16c   :  { %1482 = vmatpush1.bf16.msra.mxu1 %v3326_v27  ;;  %2692 = vmatpush3.bf16.msra.mxu0 %v3010_v61  ;;  %v3017_v27 = vld [vmem:[#allocation6 + $0x68] sm:$0xff]  }
 0x16d   :  { %1483 = vmatprep.subr.bf16.mxu1 %v3329_v31  ;;  %2693 = vmatprep.subr.bf16.mxu0 %v3011_v1  ;;  %v3018_v31 = vld [vmem:[#allocation6 + $0x28] sm:$0xff]   ;;  %v3029_v1 = vld [vmem:[#allocation6 + $0xd8] sm:$0xff]  }
 0x170   :  { %1484 = vmatpush1.bf16.msra.mxu1 %v3332_v36  ;;  %2694 = vmatpush3.bf16.msra.mxu0 %v3012_v20  ;;  %v3019_v36 = vld [vmem:[#allocation6 + $0x70] sm:$0xff]   ;;  %v3030_v20 = vld [vmem:[#allocation6 + $0x98] sm:$0xff]  }
 0x171   :  { %1485 = vmatprep.subr.bf16.mxu1 %v3335_v44  ;;  %2695 = vmatprep.subr.bf16.mxu0 %v3013_v9  ;;  %v3020_v44 = vld [vmem:[#allocation6 + $0x30] sm:$0xff]   ;;  %v3031_v9 = vld [vmem:[#allocation6 + $0xe0] sm:$0xff]  }
 0x174   :  { %1486 = vmatpush1.bf16.msra.mxu1 %v3342_v48  ;;  %2696 = vmatpush3.bf16.msra.mxu0 %v3014_v13  ;;  %v3021_v48 = vld [vmem:[#allocation6 + $0x78] sm:$0xff]   ;;  %v3032_v13 = vld [vmem:[#allocation6 + $0xa0] sm:$0xff]  }
 0x175   :  { %1487 = vmatprep.subr.bf16.mxu1 %v3345_v51  ;;  %2697 = vmatprep.subr.bf16.mxu0 %v3015_v19  ;;  %v3022_v51 = vld [vmem:[#allocation6 + $0x38] sm:$0xff]   ;;  %v3033_v19 = vld [vmem:[#allocation6 + $0xe8] sm:$0xff]  }
 0x178   :  { %1488 = vmatpush1.bf16.msra.mxu1 %v3348_v54  ;;  %2698 = vmatpush3.bf16.msra.mxu0 %v3016_v22  ;;  %v3023_v54 = vld [vmem:[#allocation6 + $0xc0] sm:$0xff]   ;;  %v761_v22 = vrot.slane %v2509_v60, %v3283_v41 }
 0x179   :  { %1489 = vmatprep.subr.bf16.mxu1 %v3351_v56  ;;  %2699 = vmatprep.subr.bf16.mxu0 %v3017_v27  ;;  %v398_v56 = vrot.slane %v3394_v29, %v3283_v41  ;;  %v3061_v29 = vld [vmem:[#allocation6 + $0x130] sm:$0xff]   ;;  %v3034_v27 = vld [vmem:[#allocation6 + $0xa8] sm:$0xff]  }
 0x17c   :  { %1490 = vmatpush1.bf16.msra.mxu1 %v3354_v58  ;;  %2700 = vmatpush3.bf16.msra.mxu0 %v3018_v31  ;;  %v463_v58 = vadd.f32 %v3337_v46, %v398_v56  ;;  %v3045_v46 = vld [vmem:[#allocation6 + $0x110] sm:$0xff]   ;;  %v3044_v56 = vld [vmem:[#allocation6 + $0x1c0] sm:$0xff]  }
 0x17d   :  { %1491 = vmatprep.subr.bf16.mxu1 %v3357_v62  ;;  %2701 = vmatprep.subr.bf16.mxu0 %v3019_v36  ;;  %v3035_v31 = vld [vmem:[#allocation6 + $0xf0] sm:$0xff]  }
 0x17e   :  { %v469_v62 = vmax.f32 %v463_v58, 0.0 }
 0x180   :  { %1492 = vmatpush1.bf16.msra.mxu1 %v3360_v0  ;;  %2702 = vmatpush3.bf16.msra.mxu0 %v3020_v44  ;;  %v3039_v0 = vld [vmem:[#allocation6 + $0x140] sm:$0xff]   ;;  %v3036_v44 = vld [vmem:[#allocation6 + $0xb0] sm:$0xff]  }
 0x181   :  { %1493 = vmatprep.subr.bf16.mxu1 %v3363_v3  ;;  %2703 = vmatprep.subr.bf16.mxu0 %v3021_v48  ;;  %v3040_v3 = vld [vmem:[#allocation6 + $0x100] sm:$0xff]   ;;  %v3037_v48 = vld [vmem:[#allocation6 + $0xf8] sm:$0xff]  }
 0x184   :  { %1494 = vmatpush1.bf16.msra.mxu1 %v3366_v5  ;;  %2704 = vmatpush3.bf16.msra.mxu0 %v3022_v51  ;;  %v1473_v5 = vpack.c.bf16 %v469_v62, %v469_v62  ;;  %v3046_v62 = vld [vmem:[#allocation6 + $0x180] sm:$0xff]  }
 0x185   :  { %1495 = vmatprep.subr.bf16.mxu1 %v3369_v7  ;;  %2711 = vmatprep.subr.bf16.mxu0 %v3023_v54  ;;  %v3041_v7 = vld [vmem:[#allocation6 + $0x148] sm:$0xff]   ;;  %v3038_v54 = vld [vmem:[#allocation6 + $0xb8] sm:$0xff]  }
 0x188   :  { %1496 = vmatpush1.bf16.msra.mxu1 %v3372_v10  ;;  %v3042_v10 = vld [vmem:[#allocation6 + $0x108] sm:$0xff]  }
 0x189   :  { %1497 = vmatprep.subr.bf16.mxu1 %v3375_v12  ;;  %v3043_v12 = vld [vmem:[#allocation6 + $0x150] sm:$0xff]  }
 0x18c   :  { %1498 = vmatpush1.bf16.msra.mxu1 %v3378_v15  ;;  %v3047_v15 = vld [vmem:[#allocation6 + $0x158] sm:$0xff]  }
 0x18d   :  { %1499 = vmatprep.subr.bf16.mxu1 %v3381_v17  ;;  %v3049_v17 = vld [vmem:[#allocation6 + $0x118] sm:$0xff]  }
 0x190   :  { %1500 = vmatpush1.bf16.msra.mxu1 %v3385_v21  ;;  %v3051_v21 = vld [vmem:[#allocation6 + $0x160] sm:$0xff]  }
 0x191   :  { %1501 = vmatprep.subr.bf16.mxu1 %v3388_v25  ;;  %v3055_v25 = vld [vmem:[#allocation6 + $0x168] sm:$0xff]  }
 0x194   :  { %1502 = vmatpush1.bf16.msra.mxu1 %v3397_v30  ;;  %v3063_v30 = vld [vmem:[#allocation6 + $0x178] sm:$0xff]  }
 0x195   :  { %1503 = vmatprep.subr.bf16.mxu1 %v3400_v33  ;;  %v3071_v33 = vld [vmem:[#allocation6 + $0x240] sm:$0xff]  }
 0x198   :  { %1504 = vmatpush1.bf16.msra.mxu1 %v3407_v49 }
 0x199   :  { %1505 = vmatprep.subr.bf16.mxu1 %v3410_v52 }
 0x19c   :  { %1506 = vmatpush1.bf16.msra.mxu1 %v3415_v40 }
 0x19d   :  { %2733 = vmatprep.subr.bf16.mxu1 %v3039_v0  ;;  %v3048_v0 = vld [vmem:[#allocation6 + $0x1c8] sm:$0xff]  }
 0x19f   :  { %1508 = vmatmul.mubr.bf16.vlgmr.msra.gmra.mrb[12].mxu1 %v1473_v5  ;;  %v3052_v5 = vld [vmem:[#allocation6 + $0x1d0] sm:$0xff]  }
 0x1a0   :  { %2734 = vmatpush3.bf16.msra.mxu1 %v3040_v3  ;;  %v3050_v3 = vld [vmem:[#allocation6 + $0x188] sm:$0xff]  }
 0x1a1   :  { %2735 = vmatprep.subr.bf16.mxu1 %v3041_v7  ;;  %v3054_v7 = vld [vmem:[#allocation6 + $0x190] sm:$0xff]  }
 0x1a4   :  { %2736 = vmatpush3.bf16.msra.mxu1 %v3042_v10  ;;  %v3056_v10 = vld [vmem:[#allocation6 + $0x1d8] sm:$0xff]  }
 0x1a5   :  { %2737 = vmatprep.subr.bf16.mxu1 %v3043_v12  ;;  %v3058_v12 = vld [vmem:[#allocation6 + $0x198] sm:$0xff]  }
 0x1a8   :  { %2738 = vmatpush3.bf16.msra.mxu1 %v3045_v46  ;;  %v3060_v46 = vld [vmem:[#allocation6 + $0x1e0] sm:$0xff]  }
 0x1a9   :  { %2739 = vmatprep.subr.bf16.mxu1 %v3047_v15  ;;  %v3062_v15 = vld [vmem:[#allocation6 + $0x1a0] sm:$0xff]  }
 0x1ac   :  { %2740 = vmatpush3.bf16.msra.mxu1 %v3049_v17  ;;  %v3064_v17 = vld [vmem:[#allocation6 + $0x1e8] sm:$0xff]  }
 0x1ad   :  { %2741 = vmatprep.subr.bf16.mxu1 %v3051_v21  ;;  %v2542_v21 = vld [vmem:[%s3514_s5 + $0x4] sm:$0x3] }
 0x1b0   :  { %2742 = vmatpush3.bf16.msra.mxu1 %v3053_v23  ;;  %v3066_v23 = vld [vmem:[#allocation6 + $0x1a8] sm:$0xff]  }
 0x1b1   :  { %2743 = vmatprep.subr.bf16.mxu1 %v3055_v25  ;;  %v3067_v25 = vld [vmem:[#allocation6 + $0x1f0] sm:$0xff]  }
 0x1b4   :  { %2744 = vmatpush3.bf16.msra.mxu1 %v3057_v26  ;;  %v3469_v26 = vrot.slane %v2542_v21, %v3283_v41 }
 0x1b5   :  { %2745 = vmatprep.subr.bf16.mxu1 %v3059_v28  ;;  %v3472_v28 = vrot.slane %v2542_v21, %v3291_v43 }
 0x1b8   :  { %2746 = vmatpush3.bf16.msra.mxu1 %v3061_v29  ;;  %v3068_v29 = vld [vmem:[#allocation6 + $0x1b0] sm:$0xff]  }
 0x1b9   :  { %2747 = vmatprep.subr.bf16.mxu1 %v3063_v30  ;;  %v3069_v30 = vld [vmem:[#allocation6 + $0x1f8] sm:$0xff]  }
 0x1bc   :  { %2748 = vmatpush3.bf16.msra.mxu1 %v3065_v32 }
 0x1bd   :  { %2777 = vmatprep.subr.bf16.mxu1 %v3071_v33 }
 0x1f2   :  { %v711_v45 = vpop.f32.mrb[4].mxu1 }
 0x1f3   :  { %v712_v49 = vadd.f32 %v711_v45, %v510_v37  ;;  %v713_v50 = vpop.f32.mrb[5].mxu1  ;;  %v2575_v45 = vld [vmem:[%s3514_s5 + $0x6] sm:$0x3] }
 0x1f4   :  { %v714_v52 = vadd.f32 %v713_v50, %v514_v38  ;;  %v715_v53 = vpop.f32.mrb[6].mxu1  ;;  %v1267_v60 = vrot.slane %v2575_v45, %v3291_v43 }
 0x1f5   :  { %v718_v55 = vmax.f32 %v712_v49, 0.0  ;;  %v716_v57 = vpop.f32.mrb[7].mxu1  ;;  %v3070_v49 = vld [vmem:[#allocation6 + $0x1b8] sm:$0xff]  }
 0x1f6   :  { %v719_v40 = vmax.f32 %v714_v52, 0.0 }
 0x1f7   :  { %v1518_v4 = vpack.c.bf16 %v718_v55, %v718_v55  ;;  %v1263_v55 = vrot.slane %v2575_v45, %v3283_v41 }
 0x1f8   :  { %v1519_v24 = vpack.c.bf16 %v719_v40, %v719_v40  ;;  %v3072_v40 = vld [vmem:[#allocation6 + $0x200] sm:$0xff]  }
 0x1fa   :  { %2207 = vmatprep.mubr.bf16.mxu0 %v1519_v24  ;;  %v962_v47 = vpop.f32.mrb[16].mxu0 }
 0x1fb   :  { %2208 = vmatmul.mubr.bf16.vlgmr.msra.gmra.mrb[24].mxu0 %v1518_v4  ;;  %v964_v42 = vpop.f32.mrb[17].mxu0  ;;  %v963_v36 = vadd.f32 %v962_v47, %v761_v22  ;;  %v3084_v22 = vld [vmem:[#allocation6 + $0x230] sm:$0xff]  }
 0x1fc   :  { %2712 = vmatpush3.bf16.msra.mxu0 %v3024_v63  ;;  %v965_v11 = vadd.f32 %v964_v42, %v765_v2  ;;  %v966_v14 = vpop.f32.mrb[18].mxu0  ;;  %v3073_v63 = vld [vmem:[#allocation6 + $0x248] sm:$0xff]  }
 0x1fd   :  { %2713 = vmatprep.subr.bf16.mxu0 %v3025_v6  ;;  %v967_v59 = vpop.f32.mrb[19].mxu0  ;;  %v969_v51 = vmax.f32 %v963_v36, 0.0  ;;  %v3074_v42 = vld [vmem:[#allocation6 + $0x208] sm:$0xff]   ;;  %v3075_v14 = vld [vmem:[#allocation6 + $0x250] sm:$0xff]  }
 0x1fe   :  { %v970_v18 = vmax.f32 %v965_v11, 0.0 }
 0x1ff   :  { %v1520_v58 = vpack.c.bf16 %v969_v51, %v969_v51 }
 0x200   :  { %2714 = vmatpush3.bf16.msra.mxu0 %v3026_v8  ;;  %v1521_v61 = vpack.c.bf16 %v970_v18, %v970_v18  ;;  %v3076_v18 = vld [vmem:[#allocation6 + $0x210] sm:$0xff]  }
 0x201   :  { %2715 = vmatprep.subr.bf16.mxu0 %v3027_v16 }
 0x202   :  { %2247 = vmatprep.mubr.bf16.mxu0 %v1521_v61  ;;  %v3078_v61 = vld [vmem:[#allocation6 + $0x218] sm:$0xff]  }
 0x204   :  { %2716 = vmatpush3.bf16.msra.mxu0 %v3028_v34  ;;  %v3077_v34 = vld [vmem:[#allocation6 + $0x258] sm:$0xff]  }
 0x205   :  { %2717 = vmatprep.subr.bf16.mxu0 %v3029_v1  ;;  %v3079_v1 = vld [vmem:[#allocation6 + $0x260] sm:$0xff]  }
 0x208   :  { %2718 = vmatpush3.bf16.msra.mxu0 %v3030_v20  ;;  %v3080_v20 = vld [vmem:[#allocation6 + $0x220] sm:$0xff]  }
 0x209   :  { %2719 = vmatprep.subr.bf16.mxu0 %v3031_v9  ;;  %v3081_v9 = vld [vmem:[#allocation6 + $0x268] sm:$0xff]  }
 0x20c   :  { %2720 = vmatpush3.bf16.msra.mxu0 %v3032_v13  ;;  %v3082_v13 = vld [vmem:[#allocation6 + $0x228] sm:$0xff]  }
 0x20d   :  { %2721 = vmatprep.subr.bf16.mxu0 %v3033_v19  ;;  %v3083_v19 = vld [vmem:[#allocation6 + $0x270] sm:$0xff]  }
 0x210   :  { %2722 = vmatpush3.bf16.msra.mxu0 %v3034_v27  ;;  %v3085_v27 = vld [vmem:[#allocation6 + $0x278] sm:$0xff]  }
 0x211   :  { %2723 = vmatprep.subr.bf16.mxu0 %v3035_v31  ;;  %v3086_v31 = vld [vmem:[#allocation6 + $0x238] sm:$0xff]  }
 0x214   :  { %2724 = vmatpush3.bf16.msra.mxu0 %v3036_v44 }
 0x215   :  { %2725 = vmatprep.subr.bf16.mxu0 %v3037_v48 }
 0x218   :  { %2726 = vmatpush3.bf16.msra.mxu0 %v3038_v54 }
 0x219   :  { %2755 = vmatprep.subr.bf16.mxu0 %v3044_v56 }
 0x21b   :  { %2248 = vmatmul.mubr.bf16.vlgmr.msra.gmra.mrb[28].mxu0 %v1520_v58 }
 0x21c   :  { %2756 = vmatpush3.bf16.msra.mxu0 %v3046_v62 }
 0x21d   :  { %2757 = vmatprep.subr.bf16.mxu0 %v3048_v0 }
 0x220   :  { %2758 = vmatpush3.bf16.msra.mxu0 %v3050_v3 }
 0x221   :  { %2759 = vmatprep.subr.bf16.mxu0 %v3052_v5 }
 0x224   :  { %2760 = vmatpush3.bf16.msra.mxu0 %v3054_v7 }
 0x225   :  { %2761 = vmatprep.subr.bf16.mxu0 %v3056_v10 }
 0x228   :  { %2762 = vmatpush3.bf16.msra.mxu0 %v3058_v12 }
 0x229   :  { %2763 = vmatprep.subr.bf16.mxu0 %v3060_v46 }
 0x22c   :  { %2764 = vmatpush3.bf16.msra.mxu0 %v3062_v15  ;;  %v2608_v15 = vld [vmem:[%s3516_s7] ss:$0 sm:$0xff]  ;;  %s3176_s7 = smov 120  }
 0x22d   :  { %2765 = vmatprep.subr.bf16.mxu0 %v3064_v17 }
 0x230   :  { %2766 = vmatpush3.bf16.msra.mxu0 %v3066_v23 }
 0x231   :  { %2767 = vmatprep.subr.bf16.mxu0 %v3067_v25 }
 0x232   :  { %v1213_v32 = vpop.f32.mrb[8].mxu1 }
 0x233   :  { %v1214_v33 = vadd.f32 %v1213_v32, %v3469_v26  ;;  %v1215_v35 = vpop.f32.mrb[9].mxu1 }
 0x234   :  { %v1216_v37 = vadd.f32 %v1215_v35, %v3472_v28  ;;  %v1217_v38 = vpop.f32.mrb[10].mxu1  ;;  %2768 = vmatpush3.bf16.msra.mxu0 %v3068_v29 }
 0x235   :  { %v1220_v50 = vmax.f32 %v1214_v33, 0.0  ;;  %v1218_v52 = vpop.f32.mrb[11].mxu1  ;;  %2769 = vmatprep.subr.bf16.mxu0 %v3069_v30 }
 0x236   :  { %v1221_v53 = vmax.f32 %v1216_v37, 0.0 }
 0x237   :  { %v1522_v24 = vpack.c.bf16 %v1220_v50, %v1220_v50 }
 0x238   :  { %v1523_v57 = vpack.c.bf16 %v1221_v53, %v1221_v53  ;;  %2770 = vmatpush3.bf16.msra.mxu0 %v3070_v49 }
 0x23a   :  { %v1464_v2 = vpop.f32.mrb[20].mxu0  ;;  %2287 = vmatprep.mubr.bf16.mxu1 %v1523_v57 }
 0x23b   :  { %v1465_v4 = vadd.f32 %v1464_v2, %v1263_v55  ;;  %v1466_v6 = vpop.f32.mrb[21].mxu0  ;;  %2288 = vmatmul.mubr.bf16.vlgmr.msra.gmra.mrb[16].mxu1 %v1522_v24 }
 0x23c   :  { %v1467_v47 = vadd.f32 %v1466_v6, %v1267_v60  ;;  %2778 = vmatpush3.bf16.msra.mxu1 %v3072_v40  ;;  %v1468_v8 = vpop.f32.mrb[22].mxu0 }
 0x23d   :  { %v1471_v11 = vmax.f32 %v1465_v4, 0.0  ;;  %2779 = vmatprep.subr.bf16.mxu1 %v3073_v63  ;;  %v1469_v41 = vpop.f32.mrb[23].mxu0 }
 0x23e   :  { %v1472_v16 = vmax.f32 %v1467_v47, 0.0  ;;  %v3175_v47 = vmov 34  }
 0x23f   :  { %v1524_v59 = vpack.c.bf16 %v1471_v11, %v1471_v11  ;;  %2813 = vset.pattern.permute.xlu0 %v3175_v47 }
 0x240   :  { %v1525_v43 = vpack.c.bf16 %v1472_v16, %v1472_v16  ;;  %2780 = vmatpush3.bf16.msra.mxu1 %v3074_v42 }
 0x241   :  { %2781 = vmatprep.subr.bf16.mxu1 %v3075_v14 }
 0x242   :  { %2327 = vmatprep.mubr.bf16.mxu0 %v1525_v43 }
 0x243   :  { %2328 = vmatmul.mubr.bf16.vlgmr.msra.gmra.mrb[32].mxu0 %v1524_v59 }
 0x244   :  { %2782 = vmatpush3.bf16.msra.mxu1 %v3076_v18 }
 0x245   :  { %2783 = vmatprep.subr.bf16.mxu1 %v3077_v34  ;;  %v3178_v34 = vmov 35  }
 0x248   :  { %2784 = vmatpush3.bf16.msra.mxu1 %v3078_v61 }
 0x249   :  { %2785 = vmatprep.subr.bf16.mxu1 %v3079_v1 }
 0x24c   :  { %2786 = vmatpush3.bf16.msra.mxu1 %v3080_v20 }
 0x24d   :  { %2787 = vmatprep.subr.bf16.mxu1 %v3081_v9 }
 0x250   :  { %2788 = vmatpush3.bf16.msra.mxu1 %v3082_v13 }
 0x251   :  { %2789 = vmatprep.subr.bf16.mxu1 %v3083_v19  ;;  %v2376_v19 = vand.u32 127, %v93_v39 }
 0x253   :  { %vm2378_vm3 = vcmp.ge.s32.totalorder %v2376_v19, 8  ;;  %vm2379_vm4 = vcmp.lt.s32.totalorder %v2376_v19, 16  ;;  %vm2381_vm5 = vcmp.ge.s32.totalorder %v2376_v19, 16  ;;  %vm2382_vm6 = vcmp.lt.s32.totalorder %v2376_v19, 24 }
 0x254   :  { %2790 = vmatpush3.bf16.msra.mxu1 %v3084_v22  ;;  %vm2384_vm7 = vcmp.ge.s32.totalorder %v2376_v19, 24  ;;  %vm2385_vm8 = vcmp.lt.s32.totalorder %v2376_v19, 32  ;;  %vm2380_vm9 = vmand %vm2378_vm3, %vm2379_vm4  ;;  %vm2377_vm11 = vcmp.lt.s32.totalorder %v2376_v19, 8  ;;  %vm2387_vm14 = vcmp.ge.s32.totalorder %v2376_v19, 34 }
 0x255   :  { %2791 = vmatprep.subr.bf16.mxu1 %v3085_v27  ;;  %vm3490_vm10 = vmand %vm2381_vm5, %vm2382_vm6 }
 0x256   :  { %vm3494_vm12 = vmand %vm2384_vm7, %vm2385_vm8 }
 0x257   :  { %vm2434_vm13 = vmor %vm3490_vm10, %vm3494_vm12 }
 0x258   :  { %2792 = vmatpush3.bf16.msra.mxu1 %v3086_v31 }
 0x272   :  { %v1509_v36 = vpop.f32.mrb[12].mxu1 }
 0x273   :  { %v1510_v44 = vadd.f32 %v1509_v36, %v3469_v26  ;;  %v1511_v48 = vpop.f32.mrb[13].mxu1 }
 0x274   :  { %v1512_v51 = vadd.f32 %v1511_v48, %v3472_v28  ;;  %v1513_v54 = vpop.f32.mrb[14].mxu1 }
 0x275   :  { %v1516_v56 = vmax.f32 %v1510_v44, 0.0  ;;  %v1514_v58 = vpop.f32.mrb[15].mxu1 }
 0x276   :  { %v1517_v62 = vmax.f32 %v1512_v51, 0.0 }
 0x277   :  { %v1526_v3 = vpack.c.bf16 %v1516_v56, %v1516_v56 }
 0x278   :  { %v1527_v0 = vpack.c.bf16 %v1517_v62, %v1517_v62 }
 0x27a   :  { %2367 = vmatprep.mubr.bf16.mxu1 %v1527_v0 }
 0x27b   :  { %2368 = vmatmul.mubr.bf16.vlgmr.msra.gmra.mrb[20].mxu1 %v1526_v3 }
 0x2ce   :  { %v2705_v5 = vpop.f32.mrb[24].mxu0 }
 0x2cf   :  { %v2706_v7 = vpop.f32.mrb[25].mxu0 }
 0x2d0   :  { %v2707_v10 = vadd.f32 %v2706_v7, %v2705_v5  ;;  %v2708_v12 = vpop.f32.mrb[26].mxu0 }
 0x2d1   :  { %v2709_v46 = vpop.f32.mrb[27].mxu0 }
 0x2d2   :  { %v2210_v23 = vadd.f32 %v2707_v10, %v2608_v15 }
 0x2ee   :  { %v2727_v17 = vpop.f32.mrb[28].mxu0 }
 0x2ef   :  { %v2728_v21 = vpop.f32.mrb[29].mxu0 }
 0x2f0   :  { %v2729_v25 = vadd.f32 %v2728_v21, %v2727_v17  ;;  %v2730_v26 = vpop.f32.mrb[30].mxu0 }
 0x2f1   :  { %v2731_v28 = vpop.f32.mrb[31].mxu0 }
 0x2f2   :  { %v2250_v29 = vadd.f32 %v2729_v25, %v2210_v23 }
 0x30e   :  { %v2749_v30 = vpop.f32.mrb[16].mxu1 }
 0x30f   :  { %v2750_v32 = vpop.f32.mrb[17].mxu1 }
 0x310   :  { %v2751_v33 = vadd.f32 %v2750_v32, %v2749_v30  ;;  %v2752_v35 = vpop.f32.mrb[18].mxu1 }
 0x311   :  { %v2753_v37 = vpop.f32.mrb[19].mxu1 }
 0x312   :  { %v2290_v38 = vadd.f32 %v2751_v33, %v2250_v29 }
 0x316   :  { %v2771_v45 = vpop.f32.mrb[32].mxu0 }
 0x317   :  { %v2772_v49 = vpop.f32.mrb[33].mxu0 }
 0x318   :  { %v2773_v50 = vadd.f32 %v2772_v49, %v2771_v45  ;;  %v2774_v52 = vpop.f32.mrb[34].mxu0 }
 0x319   :  { %v2775_v53 = vpop.f32.mrb[35].mxu0 }
 0x31a   :  { %v2330_v55 = vadd.f32 %v2773_v50, %v2290_v38 }
 0x34e   :  { %v2793_v57 = vpop.f32.mrb[20].mxu1 }
 0x34f   :  { %v2794_v60 = vpop.f32.mrb[21].mxu1 }
 0x350   :  { %v2795_v40 = vadd.f32 %v2794_v60, %v2793_v57  ;;  %v2796_v24 = vpop.f32.mrb[22].mxu1 }
 0x351   :  { %v2797_v63 = vpop.f32.mrb[23].mxu1 }
 0x352   :  { %v2370_v2 = vadd.f32 %v2795_v40, %v2330_v55 }
 0x354   :  { %v2403_v4 = vsel %vm2402_vm1, %v2370_v2, -inf  ;;  %v2389_v6 = vsel %vm2388_vm2, %v2370_v2, 0.0 }
 0x355   :  { %2404 = vmax.xlane.f32.xlu0 %v2403_v4  ;;  %2390 = vadd.xlane.f32.xlu1 %v2389_v6 }
 0x36b   :  { %2395 = vrot.lane.b32.xlu0 %v2370_v2, %s3176_s7 }
 0x3e2   :  { %v2405_v42 = vpop.xlane.xlu0 %2404  ;;  %v2391_v8 = vpop.xlane.xlu1 %2390 }
 0x3e3   :  { %v2393_v11 = vmul.f32 0.125, %v2391_v8  ;;  %v2406_v41 = vsub.f32 %v2370_v2, %v2405_v42  ;;  %v2435_v51 = vsel %vm2434_vm13, %v2405_v42, 0.0 }
 0x3e5   :  { %v2419_v14 = vsub.f32 %v2370_v2, %v2393_v11  ;;  %v2407_v43 = vmul.f32 1.442695, %v2406_v41 }
 0x3e6   :  { %v2396_v16 = vpop.permute.xlu0 %2395 }
 0x3e7   :  { %2422 = vperm.xlu0 %2813, %v2419_v14   ;;  %v2398_v59 = vsel %vm2388_vm2, %v2396_v16, 0.0  ;;  %3087 = vpow2.f32 %v2407_v43 }
 0x3e8   :  { %2399 = vadd.xlane.f32.xlu1 %v2398_v59 }
 0x3eb   :  { %2814 = vset.pattern.permute.xlu0 %v3178_v34 }
 0x3f1   :  { %v3088_v18 = vpop.eup %3087 }
 0x3f9   :  { %2410 = vrot.lane.b32.xlu1 %v3088_v18, %s3177_s13 }
 0x466   :  { %v2423_v22 = vpop.permute.xlu0 %2422 }
 0x467   :  { %v2425_v39 = vsel %vm2377_vm11, %v2423_v22, 0.0 }
 0x475   :  { %v2400_v61 = vpop.xlane.xlu1 %2399 }
 0x476   :  { %v2401_v1 = vmul.f32 0.125, %v2400_v61 }
 0x478   :  { %v2426_v20 = vsub.f32 %v2370_v2, %v2401_v1 }
 0x479   :  { %v2411_v9 = vpop.permute.xlu1 %2410 }
 0x47a   :  { %2429 = vperm.xlu0 %2814, %v2426_v20   ;;  %v2413_v13 = vsel %vm2388_vm2, %v2411_v9, 0.0 }
 0x47b   :  { %2414 = vadd.xlane.f32.xlu1 %v2413_v13 }
 0x4f9   :  { %v2430_v31 = vpop.permute.xlu0 %2429 }
 0x4fa   :  { %v2432_v44 = vsel %vm2380_vm9, %v2430_v31, 0.0 }
 0x4fb   :  { %v2433_v48 = vadd.f32 %v2432_v44, %v2425_v39 }
 0x4fd   :  { %v2436_v54 = vsub.f32 %v2433_v48, %v2435_v51 }
 0x4ff   :  { %v2437_v56 = vadd.f32 %v2436_v54, %v2370_v2 }
 0x501   :  { %v2438_v62 = vmul.f32 1.442695, %v2437_v56 }
 0x508   :  { %v2415_v58 = vpop.xlane.xlu1 %2414 }
 0x509   :  { %3089 = vlog2.f32 %v2415_v58 }
 0x50a   :  { %3091 = vrcp.f32 %v2415_v58 }
 0x50b   :  { %3093 = vpow2.f32 %v2438_v62 }
 0x513   :  { %v3090_v0 = vpop.eup %3089 }
 0x514   :  { %v3092_v3 = vpop.eup %3091  ;;  %v2418_v5 = vmul.f32 0.6931472, %v3090_v0 }
 0x515   :  { %v3094_v7 = vpop.eup %3093 }
 0x516   :  { %v2441_v10 = vsub.f32 %v2437_v56, %v2418_v5  ;;  %v2440_v12 = vmul.f32 %v3094_v7, %v3092_v3 }
 0x518   :  { %v2442_v46 = vsel %vm3494_vm12, %v2441_v10, %v2437_v56 }
 0x519   :  { %v2443_v15 = vsel %vm3490_vm10, %v2440_v12, %v2442_v46 }
 0x51a   :  { %v2444_v17 = vsel %vm2387_vm14, 0.0, %v2443_v15 }
 0x51b   :  { %2445 = vst [vmem:[%s3517_s8] sm:$0xff] %v2444_v17 }
 0x51c   :  { %2450 = vsyncpa [#allocation3], 1 }
 0x51d   :  { %2451 = vsyncpa [#allocation5], 1 }

</bundles_post_ra>
